<compile_context>
chip_gen: v7x
topology: tpu7x:2x2x1
jax: 0.10.0
libtpu: 0.0.40
codegen_flags: <defaults>
</compile_context>

<pallas_src>
import functools
import itertools

import numpy as np
import jax
import jax.numpy as jnp
from jax.experimental import pallas as pl
from jax.experimental.pallas import tpu as pltpu


_LANES = 128
_SUBLANES = 8
_MAX_TILE_ELEMS = 512 * 1024     # 2 MiB f32 per output tile (4 MiB double-buffered)
_FULL_UNROLL_MAX = 32            # fully unroll the landmark loop up to this N
_LOOP_UNROLL = 8                 # manual unroll factor for larger N


def _ceil_to(x, m):
    return ((x + m - 1) // m) * m


def _pick_row_tile(n_rows, lanes, max_tile_elems):
    """Largest tile height tR such that tR divides n_rows, tR*lanes <=
    max_tile_elems, and tR % 8 == 0 (or tR == n_rows, which satisfies the
    (8,128) block rule by being the full dimension)."""
    max_rows = max(1, max_tile_elems // lanes)
    if n_rows <= max_rows:
        return n_rows
    for t in range(min(n_rows, max_rows), 0, -1):
        if n_rows % t == 0 and t % _SUBLANES == 0:
            return t
    return n_rows   # fallback: one full-height tile (still correct)


def _landmark_image_kernel(lm_ref, out_ref, *, half_size, n_landmarks, tile_rows,
                           w_pad, win_rows, win_cols):
    # lm_ref:  (B*2N,) f32 in SMEM, packed x0, y0, x1, y1, ... per batch.
    # out_ref: (tile_rows, w_pad) f32 VMEM block of the (padded) image.
    b = pl.program_id(0)
    rt = pl.program_id(1)

    tile_lo = rt * tile_rows                      # first global image row of this tile
    tile_lo_f = tile_lo.astype(jnp.float32)
    half_f = jnp.float32(half_size)
    one = jnp.float32(1.0)
    eps = jnp.float32(1e-6)

    row_windowed = win_rows < tile_rows
    col_windowed = win_cols < w_pad
    dense = not (row_windowed or col_windowed)    # window covers the whole tile

    # Window-local coordinate maps (static; exact small integers in f32).
    row_iota = jax.lax.broadcasted_iota(jnp.int32, (win_rows, win_cols), 0).astype(jnp.float32)
    col_iota = jax.lax.broadcasted_iota(jnp.int32, (win_rows, win_cols), 1).astype(jnp.float32)

    def landmark(n):
        base = b * (2 * n_landmarks) + 2 * n
        x = lm_ref[base]
        y = lm_ref[base + 1]
        # Truncation == floor: coordinates are clamped to >= half >= 0.
        return x, y, x.astype(jnp.int32), y.astype(jnp.int32)

    def patch_values(x, y, fx, fy, row_base_f, col_base_f):
        """Contribution of one landmark over the window whose global top-left
        pixel is (row_base, col_base)."""
        fx_f = fx.astype(jnp.float32)
        fy_f = fy.astype(jnp.float32)
        # Scalar window bounds (scalar-side work, free next to the vector ops).
        r_lo = fy_f - half_f - row_base_f
        r_hi = fy_f + half_f - row_base_f
        c_lo = fx_f - half_f - col_base_f
        c_hi = fx_f + half_f - col_base_f
        drow = row_iota - (y - row_base_f)
        dcol = col_iota - (x - col_base_f)
        in_win = ((row_iota >= r_lo) & (row_iota <= r_hi)
                  & (col_iota >= c_lo) & (col_iota <= c_hi))
        dist = jnp.sqrt(drow * drow + dcol * dcol + eps)
        val = pl.reciprocal(one + dist, approx=False)   # EUP; matches 1/(1+d)
        return jnp.where(in_win, val, jnp.float32(0.0))

    if dense:
        # Whole tile is only a few vregs: keep the accumulator register-resident
        # and store to out_ref exactly once (no zero-init store, no RMW).  The
        # window compares already zero out landmarks that miss this tile.
        def contrib(n):
            x, y, fx, fy = landmark(n)
            return patch_values(x, y, fx, fy, tile_lo_f, jnp.float32(0.0))

        acc = jnp.zeros((win_rows, win_cols), jnp.float32)
        if n_landmarks <= _FULL_UNROLL_MAX:
            for n in range(n_landmarks):
                acc = acc + contrib(n)
        else:
            u = _LOOP_UNROLL

            def body(i, a):
                for j in range(u):                # manual unroll: scheduler visibility
                    a = a + contrib(i * u + j)
                return a

            acc = jax.lax.fori_loop(0, n_landmarks // u, body, acc)
            for n in range((n_landmarks // u) * u, n_landmarks):
                acc = acc + contrib(n)
        out_ref[...] = acc
        return

    # Windowed path: zero the tile once, then per landmark touch only a small
    # sublane/lane-aligned window around its patch.
    out_ref[...] = jnp.zeros_like(out_ref)

    def accumulate(n):
        x, y, fx, fy = landmark(n)
        # Skip landmarks whose patch rows miss this tile entirely (scalar test).
        hits = ((fy + half_size >= tile_lo)
                & (fy - half_size <= tile_lo + (tile_rows - 1)))

        @pl.when(hits)
        def _():
            if row_windowed:
                r0 = jnp.maximum(fy - half_size - tile_lo, 0)
                r0 = (r0 // _SUBLANES) * _SUBLANES          # sublane-aligned start
                r0 = jnp.minimum(r0, tile_rows - win_rows)  # keep window inside tile
                if tile_rows % _SUBLANES == 0:              # clamp bound stays aligned
                    r0 = pl.multiple_of(r0, _SUBLANES)
                ridx = pl.ds(r0, win_rows)
                row_base_f = tile_lo_f + r0.astype(jnp.float32)
            else:
                ridx = slice(None)
                row_base_f = tile_lo_f
            if col_windowed:
                c0 = ((fx - half_size) // _LANES) * _LANES  # lane-group aligned start
                c0 = jnp.clip(c0, 0, w_pad - win_cols)
                c0 = pl.multiple_of(c0, _LANES)
                cidx = pl.ds(c0, win_cols)
                col_base_f = c0.astype(jnp.float32)
            else:
                cidx = slice(None)
                col_base_f = jnp.float32(0.0)

            contrib = patch_values(x, y, fx, fy, row_base_f, col_base_f)
            out_ref[ridx, cidx] = out_ref[ridx, cidx] + contrib

    if n_landmarks <= _FULL_UNROLL_MAX:
        for n in range(n_landmarks):
            accumulate(n)
    else:
        u = _LOOP_UNROLL

        def body(i, carry):
            for j in range(u):                    # manual unroll inside fori_loop
                accumulate(i * u + j)
            return carry

        jax.lax.fori_loop(0, n_landmarks // u, body, 0)
        for n in range((n_landmarks // u) * u, n_landmarks):
            accumulate(n)


def landmark_image_layer(img, landmarks, patch_size, *, max_tile_elems=_MAX_TILE_ELEMS):
    """img: (B, C, H, W) NCHW (only the shape is used); landmarks: (B, N, 2) or
    (B, 2N).  Returns the (B, 1, H, W) landmark image."""
    half = int(patch_size / 2)
    B = int(landmarks.shape[0])
    H, W = int(img.shape[2]), int(img.shape[3])
    w_pad = _ceil_to(W, _LANES)                  # lane-dense, unmasked stores

    lms = landmarks.reshape(B, -1, 2).astype(jnp.float32)
    # torch.clamp(landmarks, half, h - 1 - half): H is used for both coords.
    lms = jnp.clip(lms, float(half), float(H - 1 - half))
    N = int(lms.shape[1])
    lm_flat = lms.reshape(B * 2 * N)             # 1-D SMEM layout (no 2-D padding)

    tile_rows = _pick_row_tile(H, w_pad, max_tile_elems)
    n_tiles = H // tile_rows

    # Smallest sublane/lane-aligned window guaranteed to cover a (2*half+1)^2
    # patch at any alignment.
    p = 2 * half + 1
    win_rows = min(tile_rows, _ceil_to(p + _SUBLANES - 1, _SUBLANES))
    win_cols = min(w_pad, _ceil_to(p + _LANES - 1, _LANES))

    kernel = functools.partial(
        _landmark_image_kernel, half_size=half, n_landmarks=N,
        tile_rows=tile_rows, w_pad=w_pad, win_rows=win_rows, win_cols=win_cols)

    out = pl.pallas_call(
        kernel,
        out_shape=jax.ShapeDtypeStruct((B, H, w_pad), jnp.float32),
        grid=(B, n_tiles),
        in_specs=[pl.BlockSpec(memory_space=pltpu.MemorySpace.SMEM)],
        out_specs=pl.BlockSpec((None, tile_rows, w_pad), lambda b, t: (b, t, 0)),
        compiler_params=pltpu.CompilerParams(
            dimension_semantics=("parallel", "parallel")),
        cost_estimate=pl.CostEstimate(
            flops=B * (N * 15 * win_rows * win_cols + H * w_pad),
            transcendentals=2 * B * N * win_rows * win_cols,
            bytes_accessed=4 * B * H * w_pad + 4 * B * 2 * N),
    )(lm_flat)

    return out[:, :, :W].reshape(B, 1, H, W)


def _reference_forward(img, landmarks, patch_size):
    """Pure-JAX replica of the PyTorch scatter_add_ formulation."""
    half = int(patch_size / 2)
    B = landmarks.shape[0]
    H, W = int(img.shape[2]), int(img.shape[3])
    lms = jnp.clip(
        landmarks.reshape(B, -1, 2).astype(jnp.float32),
        float(half), float(H - 1 - half))
    offs = jnp.array(
        list(itertools.product(range(-half, half + 1), range(-half, half + 1))),
        jnp.int32)                                            # (K2, 2)
    lm_long = jnp.floor(lms).astype(jnp.int32)                # (B, N, 2)
    locs = offs[None, :, None, :] + lm_long[:, None, :, :]    # (B, K2, N, 2)
    flat = locs[..., 0] + locs[..., 1] * W                    # (B, K2, N)
    dxdy = lms - lm_long.astype(jnp.float32)                  # (B, N, 2)
    sub = offs[None, :, None, :].astype(jnp.float32) - dxdy[:, None, :, :]
    vals = 1.0 / (1.0 + jnp.sqrt(jnp.sum(sub * sub, -1) + 1e-6))
    out = jnp.zeros((B, H * W), jnp.float32)
    for b in range(B):
        out = out.at[b].add(
            jnp.zeros((H * W,), jnp.float32)
            .at[flat[b].reshape(-1)].add(vals[b].reshape(-1)))
    return out.reshape(B, 1, H, W)


if __name__ == "__main__":
    key = jax.random.PRNGKey(0)
    k_img, k_lm1, k_lm2, k_lm3 = jax.random.split(key, 4)

    # Test 1: module-scale NCHW input; whole-image tile where the patch window
    # equals the tile -> dense register-accumulator path, single store.
    B, C, H, W = 2, 4, 16, 16
    N, patch_size = 8, 4
    img = jax.random.normal(k_img, (B, C, H, W), jnp.float32)
    landmarks = jax.random.uniform(
        k_lm1, (B, N, 2), jnp.float32, minval=0.0, maxval=float(H - 1))
    out = jax.block_until_ready(landmark_image_layer(img, landmarks, patch_size))
    ref = jax.block_until_ready(_reference_forward(img, landmarks, patch_size))
    assert out.shape == (B, 1, H, W)
    np.testing.assert_allclose(np.asarray(out), np.asarray(ref), rtol=1e-5, atol=1e-5)

    # Test 2: multi-tile grid + row-windowed patch-local updates; patches that
    # straddle tile boundaries and the per-landmark tile skip are exercised.
    B2, H2, W2, N2, ps2 = 2, 96, 96, 5, 4
    img2 = jnp.zeros((B2, 1, H2, W2), jnp.float32)
    lm2 = jax.random.uniform(
        k_lm2, (B2, N2, 2), jnp.float32, minval=0.0, maxval=float(H2 - 1))
    out2 = jax.block_until_ready(
        landmark_image_layer(img2, lm2, ps2, max_tile_elems=4096))
    ref2 = jax.block_until_ready(_reference_forward(img2, lm2, ps2))
    np.testing.assert_allclose(np.asarray(out2), np.asarray(ref2), rtol=1e-5, atol=1e-5)

    # Test 3: wider image -> 128-aligned column windows, width padding + crop,
    # and sublane-aligned row windows in a single whole-image tile.
    B3, H3, W3, N3, ps3 = 1, 320, 320, 6, 6
    img3 = jnp.zeros((B3, 1, H3, W3), jnp.float32)
    lm3 = jax.random.uniform(
        k_lm3, (B3, N3, 2), jnp.float32, minval=0.0, maxval=float(H3 - 1))
    out3 = jax.block_until_ready(landmark_image_layer(img3, lm3, ps3))
    ref3 = jax.block_until_ready(_reference_forward(img3, lm3, ps3))
    np.testing.assert_allclose(np.asarray(out3), np.asarray(ref3), rtol=1e-5, atol=1e-5)

    print("KERNEL_OK")
</pallas_src>

<mosaic_0001>
module attributes {stable_mosaic.version = 11 : i64} {
  func.func @_landmark_image_kernel(%arg0: i32, %arg1: i32, %arg2: memref<32xf32, #tpu.memory_space<smem>>, %arg3: memref<1x16x128xf32, #tpu.memory_space<vmem>>) attributes {dimension_semantics = [#tpu.dimension_semantics<parallel>, #tpu.dimension_semantics<parallel>], iteration_bounds = array<i64: 2, 1>, scalar_prefetch = 0 : i64, scratch_operands = 0 : i64, tpu.core_type = #tpu.core_type<tc>, window_params = [{transform_indices = @transform_0, window_bounds = array<i64: 32>}, {transform_indices = @transform_1, window_bounds = array<i64: 1, 16, 128>}]} {
    %c16_i32 = arith.constant 16 : i32
    %0 = arith.muli %arg1, %c16_i32 : i32
    %1 = arith.sitofp %0 : i32 to f32
    %2 = tpu.iota {dimensions = array<i32: 0>} : vector<16x128xi32>
    %3 = arith.sitofp %2 : vector<16x128xi32> to vector<16x128xf32>
    %4 = tpu.iota {dimensions = array<i32: 1>} : vector<16x128xi32>
    %5 = arith.sitofp %4 : vector<16x128xi32> to vector<16x128xf32>
    %cst = arith.constant 0.000000e+00 : f32
    %6 = vector.broadcast %cst : f32 to vector<16x128xf32>
    %c16_i32_0 = arith.constant 16 : i32
    %7 = arith.muli %arg0, %c16_i32_0 : i32
    %c0_i32 = arith.constant 0 : i32
    %8 = arith.addi %7, %c0_i32 : i32
    %9 = arith.index_cast %8 : i32 to index
    %10 = memref.load %arg2[%9] : memref<32xf32, #tpu.memory_space<smem>>
    %c1_i32 = arith.constant 1 : i32
    %11 = arith.addi %8, %c1_i32 : i32
    %12 = arith.index_cast %11 : i32 to index
    %13 = memref.load %arg2[%12] : memref<32xf32, #tpu.memory_space<smem>>
    %14 = arith.fptosi %10 : f32 to i32
    %15 = arith.fptosi %13 : f32 to i32
    %16 = arith.sitofp %14 : i32 to f32
    %17 = arith.sitofp %15 : i32 to f32
    %cst_1 = arith.constant 2.000000e+00 : f32
    %18 = arith.subf %17, %cst_1 : f32
    %19 = arith.subf %18, %1 : f32
    %cst_2 = arith.constant 2.000000e+00 : f32
    %20 = arith.addf %17, %cst_2 : f32
    %21 = arith.subf %20, %1 : f32
    %cst_3 = arith.constant 2.000000e+00 : f32
    %22 = arith.subf %16, %cst_3 : f32
    %cst_4 = arith.constant 0.000000e+00 : f32
    %23 = arith.subf %22, %cst_4 : f32
    %cst_5 = arith.constant 2.000000e+00 : f32
    %24 = arith.addf %16, %cst_5 : f32
    %cst_6 = arith.constant 0.000000e+00 : f32
    %25 = arith.subf %24, %cst_6 : f32
    %26 = arith.subf %13, %1 : f32
    %27 = vector.broadcast %26 : f32 to vector<16x128xf32>
    %28 = arith.subf %3, %27 : vector<16x128xf32>
    %cst_7 = arith.constant 0.000000e+00 : f32
    %29 = arith.subf %10, %cst_7 : f32
    %30 = vector.broadcast %29 : f32 to vector<16x128xf32>
    %31 = arith.subf %5, %30 : vector<16x128xf32>
    %32 = vector.broadcast %19 : f32 to vector<16x128xf32>
    %33 = arith.cmpf oge, %3, %32 : vector<16x128xf32>
    %34 = vector.broadcast %21 : f32 to vector<16x128xf32>
    %35 = arith.cmpf ole, %3, %34 : vector<16x128xf32>
    %36 = arith.andi %33, %35 : vector<16x128xi1>
    %37 = vector.broadcast %23 : f32 to vector<16x128xf32>
    %38 = arith.cmpf oge, %5, %37 : vector<16x128xf32>
    %39 = arith.andi %36, %38 : vector<16x128xi1>
    %40 = vector.broadcast %25 : f32 to vector<16x128xf32>
    %41 = arith.cmpf ole, %5, %40 : vector<16x128xf32>
    %42 = arith.andi %39, %41 : vector<16x128xi1>
    %43 = arith.mulf %28, %28 : vector<16x128xf32>
    %44 = arith.mulf %31, %31 : vector<16x128xf32>
    %45 = arith.addf %43, %44 : vector<16x128xf32>
    %cst_8 = arith.constant 9.99999997E-7 : f32
    %46 = vector.broadcast %cst_8 : f32 to vector<16x128xf32>
    %47 = arith.addf %45, %46 : vector<16x128xf32>
    %48 = math.sqrt %47 : vector<16x128xf32>
    %cst_9 = arith.constant 1.000000e+00 : f32
    %49 = vector.broadcast %cst_9 : f32 to vector<16x128xf32>
    %50 = arith.addf %49, %48 : vector<16x128xf32>
    %51 = tpu.reciprocal %50 : vector<16x128xf32> -> vector<16x128xf32>
    %cst_10 = arith.constant 0.000000e+00 : f32
    %52 = vector.broadcast %cst_10 : f32 to vector<16x128xf32>
    %53 = arith.select %42, %51, %52 : vector<16x128xi1>, vector<16x128xf32>
    %54 = arith.addf %6, %53 : vector<16x128xf32>
    %c16_i32_11 = arith.constant 16 : i32
    %55 = arith.muli %arg0, %c16_i32_11 : i32
    %c2_i32 = arith.constant 2 : i32
    %56 = arith.addi %55, %c2_i32 : i32
    %57 = arith.index_cast %56 : i32 to index
    %58 = memref.load %arg2[%57] : memref<32xf32, #tpu.memory_space<smem>>
    %c1_i32_12 = arith.constant 1 : i32
    %59 = arith.addi %56, %c1_i32_12 : i32
    %60 = arith.index_cast %59 : i32 to index
    %61 = memref.load %arg2[%60] : memref<32xf32, #tpu.memory_space<smem>>
    %62 = arith.fptosi %58 : f32 to i32
    %63 = arith.fptosi %61 : f32 to i32
    %64 = arith.sitofp %62 : i32 to f32
    %65 = arith.sitofp %63 : i32 to f32
    %cst_13 = arith.constant 2.000000e+00 : f32
    %66 = arith.subf %65, %cst_13 : f32
    %67 = arith.subf %66, %1 : f32
    %cst_14 = arith.constant 2.000000e+00 : f32
    %68 = arith.addf %65, %cst_14 : f32
    %69 = arith.subf %68, %1 : f32
    %cst_15 = arith.constant 2.000000e+00 : f32
    %70 = arith.subf %64, %cst_15 : f32
    %cst_16 = arith.constant 0.000000e+00 : f32
    %71 = arith.subf %70, %cst_16 : f32
    %cst_17 = arith.constant 2.000000e+00 : f32
    %72 = arith.addf %64, %cst_17 : f32
    %cst_18 = arith.constant 0.000000e+00 : f32
    %73 = arith.subf %72, %cst_18 : f32
    %74 = arith.subf %61, %1 : f32
    %75 = vector.broadcast %74 : f32 to vector<16x128xf32>
    %76 = arith.subf %3, %75 : vector<16x128xf32>
    %cst_19 = arith.constant 0.000000e+00 : f32
    %77 = arith.subf %58, %cst_19 : f32
    %78 = vector.broadcast %77 : f32 to vector<16x128xf32>
    %79 = arith.subf %5, %78 : vector<16x128xf32>
    %80 = vector.broadcast %67 : f32 to vector<16x128xf32>
    %81 = arith.cmpf oge, %3, %80 : vector<16x128xf32>
    %82 = vector.broadcast %69 : f32 to vector<16x128xf32>
    %83 = arith.cmpf ole, %3, %82 : vector<16x128xf32>
    %84 = arith.andi %81, %83 : vector<16x128xi1>
    %85 = vector.broadcast %71 : f32 to vector<16x128xf32>
    %86 = arith.cmpf oge, %5, %85 : vector<16x128xf32>
    %87 = arith.andi %84, %86 : vector<16x128xi1>
    %88 = vector.broadcast %73 : f32 to vector<16x128xf32>
    %89 = arith.cmpf ole, %5, %88 : vector<16x128xf32>
    %90 = arith.andi %87, %89 : vector<16x128xi1>
    %91 = arith.mulf %76, %76 : vector<16x128xf32>
    %92 = arith.mulf %79, %79 : vector<16x128xf32>
    %93 = arith.addf %91, %92 : vector<16x128xf32>
    %cst_20 = arith.constant 9.99999997E-7 : f32
    %94 = vector.broadcast %cst_20 : f32 to vector<16x128xf32>
    %95 = arith.addf %93, %94 : vector<16x128xf32>
    %96 = math.sqrt %95 : vector<16x128xf32>
    %cst_21 = arith.constant 1.000000e+00 : f32
    %97 = vector.broadcast %cst_21 : f32 to vector<16x128xf32>
    %98 = arith.addf %97, %96 : vector<16x128xf32>
    %99 = tpu.reciprocal %98 : vector<16x128xf32> -> vector<16x128xf32>
    %cst_22 = arith.constant 0.000000e+00 : f32
    %100 = vector.broadcast %cst_22 : f32 to vector<16x128xf32>
    %101 = arith.select %90, %99, %100 : vector<16x128xi1>, vector<16x128xf32>
    %102 = arith.addf %54, %101 : vector<16x128xf32>
    %c16_i32_23 = arith.constant 16 : i32
    %103 = arith.muli %arg0, %c16_i32_23 : i32
    %c4_i32 = arith.constant 4 : i32
    %104 = arith.addi %103, %c4_i32 : i32
    %105 = arith.index_cast %104 : i32 to index
    %106 = memref.load %arg2[%105] : memref<32xf32, #tpu.memory_space<smem>>
    %c1_i32_24 = arith.constant 1 : i32
    %107 = arith.addi %104, %c1_i32_24 : i32
    %108 = arith.index_cast %107 : i32 to index
    %109 = memref.load %arg2[%108] : memref<32xf32, #tpu.memory_space<smem>>
    %110 = arith.fptosi %106 : f32 to i32
    %111 = arith.fptosi %109 : f32 to i32
    %112 = arith.sitofp %110 : i32 to f32
    %113 = arith.sitofp %111 : i32 to f32
    %cst_25 = arith.constant 2.000000e+00 : f32
    %114 = arith.subf %113, %cst_25 : f32
    %115 = arith.subf %114, %1 : f32
    %cst_26 = arith.constant 2.000000e+00 : f32
    %116 = arith.addf %113, %cst_26 : f32
    %117 = arith.subf %116, %1 : f32
    %cst_27 = arith.constant 2.000000e+00 : f32
    %118 = arith.subf %112, %cst_27 : f32
    %cst_28 = arith.constant 0.000000e+00 : f32
    %119 = arith.subf %118, %cst_28 : f32
    %cst_29 = arith.constant 2.000000e+00 : f32
    %120 = arith.addf %112, %cst_29 : f32
    %cst_30 = arith.constant 0.000000e+00 : f32
    %121 = arith.subf %120, %cst_30 : f32
    %122 = arith.subf %109, %1 : f32
    %123 = vector.broadcast %122 : f32 to vector<16x128xf32>
    %124 = arith.subf %3, %123 : vector<16x128xf32>
    %cst_31 = arith.constant 0.000000e+00 : f32
    %125 = arith.subf %106, %cst_31 : f32
    %126 = vector.broadcast %125 : f32 to vector<16x128xf32>
    %127 = arith.subf %5, %126 : vector<16x128xf32>
    %128 = vector.broadcast %115 : f32 to vector<16x128xf32>
    %129 = arith.cmpf oge, %3, %128 : vector<16x128xf32>
    %130 = vector.broadcast %117 : f32 to vector<16x128xf32>
    %131 = arith.cmpf ole, %3, %130 : vector<16x128xf32>
    %132 = arith.andi %129, %131 : vector<16x128xi1>
    %133 = vector.broadcast %119 : f32 to vector<16x128xf32>
    %134 = arith.cmpf oge, %5, %133 : vector<16x128xf32>
    %135 = arith.andi %132, %134 : vector<16x128xi1>
    %136 = vector.broadcast %121 : f32 to vector<16x128xf32>
    %137 = arith.cmpf ole, %5, %136 : vector<16x128xf32>
    %138 = arith.andi %135, %137 : vector<16x128xi1>
    %139 = arith.mulf %124, %124 : vector<16x128xf32>
    %140 = arith.mulf %127, %127 : vector<16x128xf32>
    %141 = arith.addf %139, %140 : vector<16x128xf32>
    %cst_32 = arith.constant 9.99999997E-7 : f32
    %142 = vector.broadcast %cst_32 : f32 to vector<16x128xf32>
    %143 = arith.addf %141, %142 : vector<16x128xf32>
    %144 = math.sqrt %143 : vector<16x128xf32>
    %cst_33 = arith.constant 1.000000e+00 : f32
    %145 = vector.broadcast %cst_33 : f32 to vector<16x128xf32>
    %146 = arith.addf %145, %144 : vector<16x128xf32>
    %147 = tpu.reciprocal %146 : vector<16x128xf32> -> vector<16x128xf32>
    %cst_34 = arith.constant 0.000000e+00 : f32
    %148 = vector.broadcast %cst_34 : f32 to vector<16x128xf32>
    %149 = arith.select %138, %147, %148 : vector<16x128xi1>, vector<16x128xf32>
    %150 = arith.addf %102, %149 : vector<16x128xf32>
    %c16_i32_35 = arith.constant 16 : i32
    %151 = arith.muli %arg0, %c16_i32_35 : i32
    %c6_i32 = arith.constant 6 : i32
    %152 = arith.addi %151, %c6_i32 : i32
    %153 = arith.index_cast %152 : i32 to index
    %154 = memref.load %arg2[%153] : memref<32xf32, #tpu.memory_space<smem>>
    %c1_i32_36 = arith.constant 1 : i32
    %155 = arith.addi %152, %c1_i32_36 : i32
    %156 = arith.index_cast %155 : i32 to index
    %157 = memref.load %arg2[%156] : memref<32xf32, #tpu.memory_space<smem>>
    %158 = arith.fptosi %154 : f32 to i32
    %159 = arith.fptosi %157 : f32 to i32
    %160 = arith.sitofp %158 : i32 to f32
    %161 = arith.sitofp %159 : i32 to f32
    %cst_37 = arith.constant 2.000000e+00 : f32
    %162 = arith.subf %161, %cst_37 : f32
    %163 = arith.subf %162, %1 : f32
    %cst_38 = arith.constant 2.000000e+00 : f32
    %164 = arith.addf %161, %cst_38 : f32
    %165 = arith.subf %164, %1 : f32
    %cst_39 = arith.constant 2.000000e+00 : f32
    %166 = arith.subf %160, %cst_39 : f32
    %cst_40 = arith.constant 0.000000e+00 : f32
    %167 = arith.subf %166, %cst_40 : f32
    %cst_41 = arith.constant 2.000000e+00 : f32
    %168 = arith.addf %160, %cst_41 : f32
    %cst_42 = arith.constant 0.000000e+00 : f32
    %169 = arith.subf %168, %cst_42 : f32
    %170 = arith.subf %157, %1 : f32
    %171 = vector.broadcast %170 : f32 to vector<16x128xf32>
    %172 = arith.subf %3, %171 : vector<16x128xf32>
    %cst_43 = arith.constant 0.000000e+00 : f32
    %173 = arith.subf %154, %cst_43 : f32
    %174 = vector.broadcast %173 : f32 to vector<16x128xf32>
    %175 = arith.subf %5, %174 : vector<16x128xf32>
    %176 = vector.broadcast %163 : f32 to vector<16x128xf32>
    %177 = arith.cmpf oge, %3, %176 : vector<16x128xf32>
    %178 = vector.broadcast %165 : f32 to vector<16x128xf32>
    %179 = arith.cmpf ole, %3, %178 : vector<16x128xf32>
    %180 = arith.andi %177, %179 : vector<16x128xi1>
    %181 = vector.broadcast %167 : f32 to vector<16x128xf32>
    %182 = arith.cmpf oge, %5, %181 : vector<16x128xf32>
    %183 = arith.andi %180, %182 : vector<16x128xi1>
    %184 = vector.broadcast %169 : f32 to vector<16x128xf32>
    %185 = arith.cmpf ole, %5, %184 : vector<16x128xf32>
    %186 = arith.andi %183, %185 : vector<16x128xi1>
    %187 = arith.mulf %172, %172 : vector<16x128xf32>
    %188 = arith.mulf %175, %175 : vector<16x128xf32>
    %189 = arith.addf %187, %188 : vector<16x128xf32>
    %cst_44 = arith.constant 9.99999997E-7 : f32
    %190 = vector.broadcast %cst_44 : f32 to vector<16x128xf32>
    %191 = arith.addf %189, %190 : vector<16x128xf32>
    %192 = math.sqrt %191 : vector<16x128xf32>
    %cst_45 = arith.constant 1.000000e+00 : f32
    %193 = vector.broadcast %cst_45 : f32 to vector<16x128xf32>
    %194 = arith.addf %193, %192 : vector<16x128xf32>
    %195 = tpu.reciprocal %194 : vector<16x128xf32> -> vector<16x128xf32>
    %cst_46 = arith.constant 0.000000e+00 : f32
    %196 = vector.broadcast %cst_46 : f32 to vector<16x128xf32>
    %197 = arith.select %186, %195, %196 : vector<16x128xi1>, vector<16x128xf32>
    %198 = arith.addf %150, %197 : vector<16x128xf32>
    %c16_i32_47 = arith.constant 16 : i32
    %199 = arith.muli %arg0, %c16_i32_47 : i32
    %c8_i32 = arith.constant 8 : i32
    %200 = arith.addi %199, %c8_i32 : i32
    %201 = arith.index_cast %200 : i32 to index
    %202 = memref.load %arg2[%201] : memref<32xf32, #tpu.memory_space<smem>>
    %c1_i32_48 = arith.constant 1 : i32
    %203 = arith.addi %200, %c1_i32_48 : i32
    %204 = arith.index_cast %203 : i32 to index
    %205 = memref.load %arg2[%204] : memref<32xf32, #tpu.memory_space<smem>>
    %206 = arith.fptosi %202 : f32 to i32
    %207 = arith.fptosi %205 : f32 to i32
    %208 = arith.sitofp %206 : i32 to f32
    %209 = arith.sitofp %207 : i32 to f32
    %cst_49 = arith.constant 2.000000e+00 : f32
    %210 = arith.subf %209, %cst_49 : f32
    %211 = arith.subf %210, %1 : f32
    %cst_50 = arith.constant 2.000000e+00 : f32
    %212 = arith.addf %209, %cst_50 : f32
    %213 = arith.subf %212, %1 : f32
    %cst_51 = arith.constant 2.000000e+00 : f32
    %214 = arith.subf %208, %cst_51 : f32
    %cst_52 = arith.constant 0.000000e+00 : f32
    %215 = arith.subf %214, %cst_52 : f32
    %cst_53 = arith.constant 2.000000e+00 : f32
    %216 = arith.addf %208, %cst_53 : f32
    %cst_54 = arith.constant 0.000000e+00 : f32
    %217 = arith.subf %216, %cst_54 : f32
    %218 = arith.subf %205, %1 : f32
    %219 = vector.broadcast %218 : f32 to vector<16x128xf32>
    %220 = arith.subf %3, %219 : vector<16x128xf32>
    %cst_55 = arith.constant 0.000000e+00 : f32
    %221 = arith.subf %202, %cst_55 : f32
    %222 = vector.broadcast %221 : f32 to vector<16x128xf32>
    %223 = arith.subf %5, %222 : vector<16x128xf32>
    %224 = vector.broadcast %211 : f32 to vector<16x128xf32>
    %225 = arith.cmpf oge, %3, %224 : vector<16x128xf32>
    %226 = vector.broadcast %213 : f32 to vector<16x128xf32>
    %227 = arith.cmpf ole, %3, %226 : vector<16x128xf32>
    %228 = arith.andi %225, %227 : vector<16x128xi1>
    %229 = vector.broadcast %215 : f32 to vector<16x128xf32>
    %230 = arith.cmpf oge, %5, %229 : vector<16x128xf32>
    %231 = arith.andi %228, %230 : vector<16x128xi1>
    %232 = vector.broadcast %217 : f32 to vector<16x128xf32>
    %233 = arith.cmpf ole, %5, %232 : vector<16x128xf32>
    %234 = arith.andi %231, %233 : vector<16x128xi1>
    %235 = arith.mulf %220, %220 : vector<16x128xf32>
    %236 = arith.mulf %223, %223 : vector<16x128xf32>
    %237 = arith.addf %235, %236 : vector<16x128xf32>
    %cst_56 = arith.constant 9.99999997E-7 : f32
    %238 = vector.broadcast %cst_56 : f32 to vector<16x128xf32>
    %239 = arith.addf %237, %238 : vector<16x128xf32>
    %240 = math.sqrt %239 : vector<16x128xf32>
    %cst_57 = arith.constant 1.000000e+00 : f32
    %241 = vector.broadcast %cst_57 : f32 to vector<16x128xf32>
    %242 = arith.addf %241, %240 : vector<16x128xf32>
    %243 = tpu.reciprocal %242 : vector<16x128xf32> -> vector<16x128xf32>
    %cst_58 = arith.constant 0.000000e+00 : f32
    %244 = vector.broadcast %cst_58 : f32 to vector<16x128xf32>
    %245 = arith.select %234, %243, %244 : vector<16x128xi1>, vector<16x128xf32>
    %246 = arith.addf %198, %245 : vector<16x128xf32>
    %c16_i32_59 = arith.constant 16 : i32
    %247 = arith.muli %arg0, %c16_i32_59 : i32
    %c10_i32 = arith.constant 10 : i32
    %248 = arith.addi %247, %c10_i32 : i32
    %249 = arith.index_cast %248 : i32 to index
    %250 = memref.load %arg2[%249] : memref<32xf32, #tpu.memory_space<smem>>
    %c1_i32_60 = arith.constant 1 : i32
    %251 = arith.addi %248, %c1_i32_60 : i32
    %252 = arith.index_cast %251 : i32 to index
    %253 = memref.load %arg2[%252] : memref<32xf32, #tpu.memory_space<smem>>
    %254 = arith.fptosi %250 : f32 to i32
    %255 = arith.fptosi %253 : f32 to i32
    %256 = arith.sitofp %254 : i32 to f32
    %257 = arith.sitofp %255 : i32 to f32
    %cst_61 = arith.constant 2.000000e+00 : f32
    %258 = arith.subf %257, %cst_61 : f32
    %259 = arith.subf %258, %1 : f32
    %cst_62 = arith.constant 2.000000e+00 : f32
    %260 = arith.addf %257, %cst_62 : f32
    %261 = arith.subf %260, %1 : f32
    %cst_63 = arith.constant 2.000000e+00 : f32
    %262 = arith.subf %256, %cst_63 : f32
    %cst_64 = arith.constant 0.000000e+00 : f32
    %263 = arith.subf %262, %cst_64 : f32
    %cst_65 = arith.constant 2.000000e+00 : f32
    %264 = arith.addf %256, %cst_65 : f32
    %cst_66 = arith.constant 0.000000e+00 : f32
    %265 = arith.subf %264, %cst_66 : f32
    %266 = arith.subf %253, %1 : f32
    %267 = vector.broadcast %266 : f32 to vector<16x128xf32>
    %268 = arith.subf %3, %267 : vector<16x128xf32>
    %cst_67 = arith.constant 0.000000e+00 : f32
    %269 = arith.subf %250, %cst_67 : f32
    %270 = vector.broadcast %269 : f32 to vector<16x128xf32>
    %271 = arith.subf %5, %270 : vector<16x128xf32>
    %272 = vector.broadcast %259 : f32 to vector<16x128xf32>
    %273 = arith.cmpf oge, %3, %272 : vector<16x128xf32>
    %274 = vector.broadcast %261 : f32 to vector<16x128xf32>
    %275 = arith.cmpf ole, %3, %274 : vector<16x128xf32>
    %276 = arith.andi %273, %275 : vector<16x128xi1>
    %277 = vector.broadcast %263 : f32 to vector<16x128xf32>
    %278 = arith.cmpf oge, %5, %277 : vector<16x128xf32>
    %279 = arith.andi %276, %278 : vector<16x128xi1>
    %280 = vector.broadcast %265 : f32 to vector<16x128xf32>
    %281 = arith.cmpf ole, %5, %280 : vector<16x128xf32>
    %282 = arith.andi %279, %281 : vector<16x128xi1>
    %283 = arith.mulf %268, %268 : vector<16x128xf32>
    %284 = arith.mulf %271, %271 : vector<16x128xf32>
    %285 = arith.addf %283, %284 : vector<16x128xf32>
    %cst_68 = arith.constant 9.99999997E-7 : f32
    %286 = vector.broadcast %cst_68 : f32 to vector<16x128xf32>
    %287 = arith.addf %285, %286 : vector<16x128xf32>
    %288 = math.sqrt %287 : vector<16x128xf32>
    %cst_69 = arith.constant 1.000000e+00 : f32
    %289 = vector.broadcast %cst_69 : f32 to vector<16x128xf32>
    %290 = arith.addf %289, %288 : vector<16x128xf32>
    %291 = tpu.reciprocal %290 : vector<16x128xf32> -> vector<16x128xf32>
    %cst_70 = arith.constant 0.000000e+00 : f32
    %292 = vector.broadcast %cst_70 : f32 to vector<16x128xf32>
    %293 = arith.select %282, %291, %292 : vector<16x128xi1>, vector<16x128xf32>
    %294 = arith.addf %246, %293 : vector<16x128xf32>
    %c16_i32_71 = arith.constant 16 : i32
    %295 = arith.muli %arg0, %c16_i32_71 : i32
    %c12_i32 = arith.constant 12 : i32
    %296 = arith.addi %295, %c12_i32 : i32
    %297 = arith.index_cast %296 : i32 to index
    %298 = memref.load %arg2[%297] : memref<32xf32, #tpu.memory_space<smem>>
    %c1_i32_72 = arith.constant 1 : i32
    %299 = arith.addi %296, %c1_i32_72 : i32
    %300 = arith.index_cast %299 : i32 to index
    %301 = memref.load %arg2[%300] : memref<32xf32, #tpu.memory_space<smem>>
    %302 = arith.fptosi %298 : f32 to i32
    %303 = arith.fptosi %301 : f32 to i32
    %304 = arith.sitofp %302 : i32 to f32
    %305 = arith.sitofp %303 : i32 to f32
    %cst_73 = arith.constant 2.000000e+00 : f32
    %306 = arith.subf %305, %cst_73 : f32
    %307 = arith.subf %306, %1 : f32
    %cst_74 = arith.constant 2.000000e+00 : f32
    %308 = arith.addf %305, %cst_74 : f32
    %309 = arith.subf %308, %1 : f32
    %cst_75 = arith.constant 2.000000e+00 : f32
    %310 = arith.subf %304, %cst_75 : f32
    %cst_76 = arith.constant 0.000000e+00 : f32
    %311 = arith.subf %310, %cst_76 : f32
    %cst_77 = arith.constant 2.000000e+00 : f32
    %312 = arith.addf %304, %cst_77 : f32
    %cst_78 = arith.constant 0.000000e+00 : f32
    %313 = arith.subf %312, %cst_78 : f32
    %314 = arith.subf %301, %1 : f32
    %315 = vector.broadcast %314 : f32 to vector<16x128xf32>
    %316 = arith.subf %3, %315 : vector<16x128xf32>
    %cst_79 = arith.constant 0.000000e+00 : f32
    %317 = arith.subf %298, %cst_79 : f32
    %318 = vector.broadcast %317 : f32 to vector<16x128xf32>
    %319 = arith.subf %5, %318 : vector<16x128xf32>
    %320 = vector.broadcast %307 : f32 to vector<16x128xf32>
    %321 = arith.cmpf oge, %3, %320 : vector<16x128xf32>
    %322 = vector.broadcast %309 : f32 to vector<16x128xf32>
    %323 = arith.cmpf ole, %3, %322 : vector<16x128xf32>
    %324 = arith.andi %321, %323 : vector<16x128xi1>
    %325 = vector.broadcast %311 : f32 to vector<16x128xf32>
    %326 = arith.cmpf oge, %5, %325 : vector<16x128xf32>
    %327 = arith.andi %324, %326 : vector<16x128xi1>
    %328 = vector.broadcast %313 : f32 to vector<16x128xf32>
    %329 = arith.cmpf ole, %5, %328 : vector<16x128xf32>
    %330 = arith.andi %327, %329 : vector<16x128xi1>
    %331 = arith.mulf %316, %316 : vector<16x128xf32>
    %332 = arith.mulf %319, %319 : vector<16x128xf32>
    %333 = arith.addf %331, %332 : vector<16x128xf32>
    %cst_80 = arith.constant 9.99999997E-7 : f32
    %334 = vector.broadcast %cst_80 : f32 to vector<16x128xf32>
    %335 = arith.addf %333, %334 : vector<16x128xf32>
    %336 = math.sqrt %335 : vector<16x128xf32>
    %cst_81 = arith.constant 1.000000e+00 : f32
    %337 = vector.broadcast %cst_81 : f32 to vector<16x128xf32>
    %338 = arith.addf %337, %336 : vector<16x128xf32>
    %339 = tpu.reciprocal %338 : vector<16x128xf32> -> vector<16x128xf32>
    %cst_82 = arith.constant 0.000000e+00 : f32
    %340 = vector.broadcast %cst_82 : f32 to vector<16x128xf32>
    %341 = arith.select %330, %339, %340 : vector<16x128xi1>, vector<16x128xf32>
    %342 = arith.addf %294, %341 : vector<16x128xf32>
    %c16_i32_83 = arith.constant 16 : i32
    %343 = arith.muli %arg0, %c16_i32_83 : i32
    %c14_i32 = arith.constant 14 : i32
    %344 = arith.addi %343, %c14_i32 : i32
    %345 = arith.index_cast %344 : i32 to index
    %346 = memref.load %arg2[%345] : memref<32xf32, #tpu.memory_space<smem>>
    %c1_i32_84 = arith.constant 1 : i32
    %347 = arith.addi %344, %c1_i32_84 : i32
    %348 = arith.index_cast %347 : i32 to index
    %349 = memref.load %arg2[%348] : memref<32xf32, #tpu.memory_space<smem>>
    %350 = arith.fptosi %346 : f32 to i32
    %351 = arith.fptosi %349 : f32 to i32
    %352 = arith.sitofp %350 : i32 to f32
    %353 = arith.sitofp %351 : i32 to f32
    %cst_85 = arith.constant 2.000000e+00 : f32
    %354 = arith.subf %353, %cst_85 : f32
    %355 = arith.subf %354, %1 : f32
    %cst_86 = arith.constant 2.000000e+00 : f32
    %356 = arith.addf %353, %cst_86 : f32
    %357 = arith.subf %356, %1 : f32
    %cst_87 = arith.constant 2.000000e+00 : f32
    %358 = arith.subf %352, %cst_87 : f32
    %cst_88 = arith.constant 0.000000e+00 : f32
    %359 = arith.subf %358, %cst_88 : f32
    %cst_89 = arith.constant 2.000000e+00 : f32
    %360 = arith.addf %352, %cst_89 : f32
    %cst_90 = arith.constant 0.000000e+00 : f32
    %361 = arith.subf %360, %cst_90 : f32
    %362 = arith.subf %349, %1 : f32
    %363 = vector.broadcast %362 : f32 to vector<16x128xf32>
    %364 = arith.subf %3, %363 : vector<16x128xf32>
    %cst_91 = arith.constant 0.000000e+00 : f32
    %365 = arith.subf %346, %cst_91 : f32
    %366 = vector.broadcast %365 : f32 to vector<16x128xf32>
    %367 = arith.subf %5, %366 : vector<16x128xf32>
    %368 = vector.broadcast %355 : f32 to vector<16x128xf32>
    %369 = arith.cmpf oge, %3, %368 : vector<16x128xf32>
    %370 = vector.broadcast %357 : f32 to vector<16x128xf32>
    %371 = arith.cmpf ole, %3, %370 : vector<16x128xf32>
    %372 = arith.andi %369, %371 : vector<16x128xi1>
    %373 = vector.broadcast %359 : f32 to vector<16x128xf32>
    %374 = arith.cmpf oge, %5, %373 : vector<16x128xf32>
    %375 = arith.andi %372, %374 : vector<16x128xi1>
    %376 = vector.broadcast %361 : f32 to vector<16x128xf32>
    %377 = arith.cmpf ole, %5, %376 : vector<16x128xf32>
    %378 = arith.andi %375, %377 : vector<16x128xi1>
    %379 = arith.mulf %364, %364 : vector<16x128xf32>
    %380 = arith.mulf %367, %367 : vector<16x128xf32>
    %381 = arith.addf %379, %380 : vector<16x128xf32>
    %cst_92 = arith.constant 9.99999997E-7 : f32
    %382 = vector.broadcast %cst_92 : f32 to vector<16x128xf32>
    %383 = arith.addf %381, %382 : vector<16x128xf32>
    %384 = math.sqrt %383 : vector<16x128xf32>
    %cst_93 = arith.constant 1.000000e+00 : f32
    %385 = vector.broadcast %cst_93 : f32 to vector<16x128xf32>
    %386 = arith.addf %385, %384 : vector<16x128xf32>
    %387 = tpu.reciprocal %386 : vector<16x128xf32> -> vector<16x128xf32>
    %cst_94 = arith.constant 0.000000e+00 : f32
    %388 = vector.broadcast %cst_94 : f32 to vector<16x128xf32>
    %389 = arith.select %378, %387, %388 : vector<16x128xi1>, vector<16x128xf32>
    %390 = arith.addf %342, %389 : vector<16x128xf32>
    %c0 = arith.constant 0 : index
    %c0_95 = arith.constant 0 : index
    %c0_96 = arith.constant 0 : index
    %391 = vector.load %arg3[%c0, %c0_95, %c0_96] : memref<1x16x128xf32, #tpu.memory_space<vmem>>, vector<1x16x128xf32>
    %392 = vector.shape_cast %391 : vector<1x16x128xf32> to vector<16x128xf32>
    %393 = vector.shape_cast %390 : vector<16x128xf32> to vector<1x16x128xf32>
    tpu.vector_store %arg3[%c0, %c0_95, %c0_96], %393 {strides = array<i32>} : memref<1x16x128xf32, #tpu.memory_space<vmem>>, vector<1x16x128xf32>,
    return
  }
  func.func @transform_0(%arg0: i32, %arg1: i32) -> i32 {
    %c0_i32 = arith.constant 0 : i32
    %c0_i32_0 = arith.constant 0 : i32
    return %c0_i32 : i32
  }
  func.func @transform_1(%arg0: i32, %arg1: i32) -> (i32, i32, i32) {
    %c0_i32 = arith.constant 0 : i32
    %c0_i32_0 = arith.constant 0 : i32
    return %arg0, %arg1, %c0_i32 : i32, i32, i32
  }
}

</mosaic_0001>

<bundles_post_ra>
// kernel: tpu_custom_call.1
= control target key start
LH: loop header
LB: loop body
LE: loop exit
PB: predicated region body
PF: predicated region fallthrough
CT: control target
= control target key end

     0   :  { %6 = vsyncpa [#allocation4], 0  ;;  %s2295_s0 = inlined_call_operand.hbm [shape: f32[32], index: 0, kind: input, shape index: {}]   ;;  %s2296_s1 = inlined_call_operand.hbm [shape: f32[2,16,128], index: 1, kind: output, shape index: {}]  }
   0x1   :  { %7 = vsyncpa [#allocation3], 0 }
   0x2   :  { %9 = vsyncpa [#allocation3 + $0x1], 0  ;;  %s1096_s6 = smov 0   ;;  %s1098_s7 = smov 0  }
   0x3   :  { %s1100_s8 = smov 0   ;;  %s1102_s9 = smov 0  }
   0x4   :  { %s1104_s10 = smov 0   ;;  %s1106_s11 = smov 0  }
   0x5 LB: > { %s743_s12 = sadd.s32 4294967295, %s1080_s11   ;;  %s744_s13 = sadd.s32 4294967294, %s1080_s11   ;;  %s1080_s11 = sphi %s1106_s11, %s15_s11   ;;  %s1076_s10 = sphi %s1104_s10, %s2404_s10   ;;  %s1072_s9 = sphi %s1102_s9, %s2403_s9   ;;  %s1068_s8 = sphi %s1100_s8, %s2402_s8   ;;  %s1064_s7 = sphi %s1098_s7, %s2401_s7   ;;  %s1060_s6 = sphi %s1096_s6, %s2400_s6  }
   0x6   : > { %s27_s14 = sadd.s32 1, %s1076_s10  ;;  %s57_s15 = sadd.s32 1, %s1068_s8 }
   0x7   : > { %p29_p0 = scmp.ge.s32.totalorder %s27_s14, 2  ;;  %p67_p1 = scmp.ne.s32.totalorder %s1068_s8, %s1064_s7 }
   0x8   : > { %p68_p2 = scmp.eq.s32.totalorder %s743_s12, 1  ;;  %p73_p3 = scmp.ne.s32.totalorder %s1064_s7, %s1060_s6 }
   0x9   : > { %s2406_s14 = smov (%p29_p0, %s27_s14), 0  ;;  %p74_p5 = scmp.eq.s32.totalorder %s744_s13, 1 }
   0xa   : > { %p1136_p4 = por %p68_p2, %p67_p1  ;;  %s52_s17 = ssub.s32 %s1076_s10, %s2406_s14 }
   0xb   : > { %p745_p6 = scmp.ge.s32.totalorder %s1080_s11, 1  ;;  %p55_p7 = scmp.eq.s32.totalorder %s52_s17, 0 }
   0xc   : > { %p1143_p8 = por %p74_p5, %p73_p3  ;;  %p81_p9 = scmp.lt.s32.totalorder %s1080_s11, 3 }
   0xd   : > { %s1149_s19 = scalar_select %p55_p7, %s1068_s8, %s57_s15  }
   0xe   : > { %p1151_p10 = pnand %p745_p6, %p81_p9  ;;  %p1155_p11 = scmp.eq.s32.totalorder %s743_s12, 0 }
   0xf   : > { %s985_s24 = scalar_lea.hbm %s2295_s0, 16 }
  0x10   : > { %p859_p12 = pneg %p1151_p10  ;;  %p986_p0 = scmp.ne.s32.totalorder %s2295_s0, %s985_s24 }
  0x11   : > { %p992_p5 = scmp.lt.u32.totalorder %s985_s24, %s2295_s0 }
  0x12   : > { %p860_p13 = pnand %p1155_p11, %p859_p12 }
  0x14   : > { %p987_p1 = pneg %p860_p13 }
  0x16   : > { %p988_p2 = pnand %p987_p1, %p986_p0 }
  0x18   : > { %p989_p3 = pneg %p988_p2 }
  0x1a   : > { %p994_p6 = pnand %p992_p5, %p989_p3 }
  0x1c   : > { %997 = shalt.err (!%p994_p6)
}
  0x1d   : > { %s1082_s29 = smov [#allocation2]   ;;  %105 = sbr.rel (%p1151_p10) target bundleno = 168 (0xa8), region = 24 }
  0x1e   : > { %862 = dma.hbm_to_smem (!%p860_p13), %s2295_s0, 16, %s1082_s29, [#allocation4]  }
  0x24   : > { %1051 = dma.done.wait (%p1155_p11), [#allocation4], 16  }
  0x25   : > { %1053 = vsyncadd (%p1155_p11), [#allocation4], 4294967280 }
  0x26   : > { %111 = sfence }
  0x27   : > { %s1182_s3 = sshll.u32 %s1072_s9, 4  ;;  %v124_v0 = vlaneseq }
  0x28   : > { %s133_s4 = sld [smem:[#allocation2 + %s1182_s3]]  ;;  %s134_s5 = sadd.s32 1, %s1182_s3 }
  0x29   : > { %s197_s12 = sadd.s32 2, %s1182_s3  ;;  %s199_s13 = sadd.s32 3, %s1182_s3  ;;  %v125_v1 = vshrl.u32 %v124_v0, 7  ;;  %v130_v2 = vand.u32 127, %v124_v0 }
  0x2a   : > { %s135_s15 = sld [smem:[#allocation2 + %s134_s5]]  ;;  %s262_s25 = sadd.s32 4, %s1182_s3 }
  0x2b   : > { %s1188_s17 = sld [smem:[#allocation2 + %s197_s12]]  ;;  %v126_v3 = vadd.s32 8, %v125_v1  ;;  %v1192_v4 = vcvt.s32.f32 %v125_v1  ;;  %v1194_v5 = vcvt.s32.f32 %v130_v2  ;;  %s264_s27 = sadd.s32 5, %s1182_s3 }
  0x2c   : > { %s1190_s20 = sld [smem:[#allocation2 + %s199_s13]] }
  0x2d   : > { %v1196_v6 = vcvt.s32.f32 %v126_v3  ;;  %s1205_s28 = sld [smem:[#allocation2 + %s262_s25]] }
  0x2e   : > { %p773_p7 = scmp.lt.s32.totalorder %s133_s4, 0  ;;  %s774_s21 = sceil.f32 %s133_s4  ;;  %v150_v8 = vstv %s133_s4 }
  0x2f   : > { %s775_s22 = sfloor.f32 %s133_s4  ;;  %v151_v12 = vsub.f32 %v1194_v5, %v150_v8  ;;  %s1211_s30 = sld [smem:[#allocation2 + %s264_s27]] }
  0x30   : > { %s2408_s21 = smov (!%p773_p7, %s774_s21), %s775_s22  ;;  %p778_p9 = scmp.lt.s32.totalorder %s135_s15, 0  ;;  %v147_v7 = vstv %s135_s15 }
  0x31   : > { %s779_s23 = sceil.f32 %s135_s15  ;;  %s780_s24 = sfloor.f32 %s135_s15  ;;  %v215_v10 = vstv %s1188_s17  ;;  %v148_v11 = vsub.f32 %v1192_v4, %v147_v7  ;;  %v149_v13 = vsub.f32 %v1196_v6, %v147_v7  ;;  %v170_v17 = vmul.f32 %v151_v12, %v151_v12 }
  0x32   : > { %s777_s26 = scvt.f32.s32 %s2408_s21  ;;  %s2410_s23 = smov (!%p778_p9, %s779_s23), %s780_s24  ;;  %v212_v9 = vstv %s1190_s20  ;;  %v216_v15 = vsub.f32 %v1194_v5, %v215_v10 }
  0x33   : > { %v213_v14 = vsub.f32 %v1192_v4, %v212_v9  ;;  %s782_s2 = scvt.f32.s32 %s2410_s23  ;;  %v168_v16 = vmul.f32 %v148_v11, %v148_v11  ;;  %p783_p10 = scmp.lt.s32.totalorder %s1188_s17, 0  ;;  %v169_v18 = vmul.f32 %v149_v13, %v149_v13  ;;  %v214_v21 = vsub.f32 %v1196_v6, %v212_v9 }
  0x34   : > { %s1207_s29 = scvt.s32.f32 %s777_s26  ;;  %s784_s4 = sceil.f32 %s1188_s17  ;;  %v235_v20 = vmul.f32 %v216_v15, %v216_v15  ;;  %v280_v26 = vstv %s1205_s28 }
  0x35   : > { %s785_s5 = sfloor.f32 %s1188_s17  ;;  %v233_v19 = vmul.f32 %v213_v14, %v213_v14  ;;  %s1217_s13 = scvt.s32.f32 %s782_s2  ;;  %v171_v22 = vadd.f32 %v170_v17, %v168_v16  ;;  %v172_v23 = vadd.f32 %v170_v17, %v169_v18  ;;  %v277_v25 = vstv %s1211_s30 }
  0x36   : > { %s752_s12 = sadd.f32 -2.0, %s1207_s29  ;;  %s2412_s4 = smov (!%p783_p10, %s784_s4), %s785_s5  ;;  %v234_v27 = vmul.f32 %v214_v21, %v214_v21  ;;  %v278_v30 = vsub.f32 %v1192_v4, %v277_v25  ;;  %v281_v31 = vsub.f32 %v1194_v5, %v280_v26  ;;  %v279_v34 = vsub.f32 %v1196_v6, %v277_v25 }
  0x37   : > { %p788_p11 = scmp.lt.s32.totalorder %s1190_s20, 0  ;;  %s789_s21 = sceil.f32 %s1190_s20  ;;  %v236_v24 = vadd.f32 %v235_v20, %v233_v19  ;;  %v1230_v28 = vadd.f32 1e-06, %v171_v22  ;;  %v1232_v29 = vadd.f32 1e-06, %v172_v23 }
  0x38   : > { %s790_s22 = sfloor.f32 %s1190_s20  ;;  %p793_p12 = scmp.lt.s32.totalorder %s1205_s28, 0  ;;  %v237_v33 = vadd.f32 %v235_v20, %v234_v27  ;;  %v298_v35 = vmul.f32 %v278_v30, %v278_v30  ;;  %v300_v36 = vmul.f32 %v281_v31, %v281_v31  ;;  %v299_v38 = vmul.f32 %v279_v34, %v279_v34 }
  0x39   : > { %s794_s17 = sceil.f32 %s1205_s28  ;;  %s795_s23 = sfloor.f32 %s1205_s28  ;;  %v1238_v32 = vadd.f32 1e-06, %v236_v24  ;;  %921 = vrsqrt.f32 %v1230_v28  ;;  %v1286_v47 = vstv %s752_s12  ;;  %vm177_vm0 = vcmp.eq.f32.partialorder %v1230_v28, inf }
  0x3a   : > { %s787_s25 = scvt.f32.s32 %s2412_s4  ;;  %s2414_s21 = smov (!%p788_p11, %s789_s21), %s790_s22  ;;  %923 = vrsqrt.f32 %v1232_v29  ;;  %v1255_v37 = vadd.f32 1e-06, %v237_v33  ;;  %v301_v39 = vadd.f32 %v300_v36, %v298_v35  ;;  %v302_v40 = vadd.f32 %v300_v36, %v299_v38 }
  0x3b   : > { %s2416_s17 = smov (!%p793_p12, %s794_s17), %s795_s23  ;;  %s327_s27 = sadd.s32 6, %s1182_s3  ;;  %925 = vrsqrt.f32 %v1238_v32  ;;  %vm179_vm1 = vcmp.eq.f32.partialorder %v1230_v28, 0.0  ;;  %v180_v51 = vand.u32 2147483648, %v1230_v28  ;;  %vm184_vm2 = vcmp.eq.f32.partialorder %v1232_v29, inf }
  0x3c   : > { %s329_s20 = sadd.s32 7, %s1182_s3  ;;  %s792_s2 = scvt.f32.s32 %s2414_s21  ;;  %927 = vrsqrt.f32 %v1255_v37  ;;  %v1274_v41 = vadd.f32 1e-06, %v301_v39  ;;  %v1297_v50 = vadd.f32 1e-06, %v302_v40  ;;  %vm186_vm3 = vcmp.eq.f32.partialorder %v1232_v29, 0.0 }
  0x3d   : > { %s1249_s4 = scvt.s32.f32 %s787_s25  ;;  %s797_s28 = scvt.f32.s32 %s2416_s17  ;;  %v187_v59 = vand.u32 2147483648, %v1232_v29  ;;  %vm242_vm4 = vcmp.eq.f32.partialorder %v1238_v32, inf  ;;  %v245_v1 = vand.u32 2147483648, %v1238_v32  ;;  %vm244_vm6 = vcmp.eq.f32.partialorder %v1238_v32, 0.0 }
  0x3e   : > { %p798_p13 = scmp.lt.s32.totalorder %s1211_s30, 0  ;;  %s1257_s5 = sld [smem:[#allocation2 + %s327_s27]]  ;;  %929 = vrsqrt.f32 %v1274_v41  ;;  %vm249_vm9 = vcmp.eq.f32.partialorder %v1255_v37, inf  ;;  %vm251_vm10 = vcmp.eq.f32.partialorder %v1255_v37, 0.0  ;;  %vm161_vm11 = vcmp.ge.f32.partialorder %v1194_v5, %v1286_v47 }
  0x3f   : > { %s1259_s22 = sld [smem:[#allocation2 + %s329_s20]]  ;;  %s799_s21 = sceil.f32 %s1211_s30  ;;  %931 = vrsqrt.f32 %v1297_v50  ;;  %v252_v16 = vand.u32 2147483648, %v1255_v37  ;;  %vm307_vm15 = vcmp.eq.f32.partialorder %v1274_v41, inf }
  0x40   : > { %s800_s23 = sfloor.f32 %s1211_s30  ;;  %s1263_s25 = scvt.s32.f32 %s792_s2 }
  0x41   : > { %s392_s24 = sadd.s32 8, %s1182_s3  ;;  %s394_s17 = sadd.s32 9, %s1182_s3 }
  0x42   : > { %s2418_s21 = smov (!%p798_p13, %s799_s21), %s800_s23  ;;  %s210_s27 = sadd.f32 2.0, %s1249_s4 }
  0x43   : > { %s1272_s30 = scvt.s32.f32 %s797_s28  ;;  %s1276_s20 = sld [smem:[#allocation2 + %s392_s24]]  ;;  %v922_v42 = vpop.eup %921 }
  0x44   : > { %s1278_s2 = sld [smem:[#allocation2 + %s394_s17]]  ;;  %s753_s26 = sadd.f32 -2.0, %s1263_s25  ;;  %v924_v43 = vpop.eup %923  ;;  %v345_v45 = vstv %s1257_s5  ;;  %v176_v49 = vmul.f32 %v922_v42, %v1230_v28  ;;  %v1403_v27 = vstv %s210_s27 }
  0x45   : > { %v342_v44 = vstv %s1259_s22  ;;  %v926_v46 = vpop.eup %925  ;;  %s2301_s28 = sadd.f32 2.0, %s1207_s29  ;;  %s802_s24 = scvt.f32.s32 %s2418_s21  ;;  %v183_v52 = vmul.f32 %v924_v43, %v1232_v29  ;;  %v346_v54 = vsub.f32 %v1194_v5, %v345_v45 }
  0x46   : > { %p803_p0 = scmp.lt.s32.totalorder %s1257_s5, 0  ;;  %s804_s29 = sceil.f32 %s1257_s5  ;;  %v343_v53 = vsub.f32 %v1192_v4, %v342_v44  ;;  %v241_v56 = vmul.f32 %v926_v46, %v1238_v32  ;;  %v344_v57 = vsub.f32 %v1196_v6, %v342_v44  ;;  %v928_v60 = vpop.eup %927  ;;  %v178_v61 = vsel %vm177_vm0, %v1230_v28, %v176_v49 }
  0x47   : > { %v1290_v48 = vstv %s2301_s28  ;;  %s805_s12 = sfloor.f32 %s1257_s5  ;;  %p808_p1 = scmp.lt.s32.totalorder %s1259_s22, 0  ;;  %v185_v0 = vsel %vm184_vm2, %v1232_v29, %v183_v52  ;;  %v365_v3 = vmul.f32 %v346_v54, %v346_v54  ;;  %v181_v9 = vsel %vm179_vm1, %v180_v51, %v178_v61 }
  0x48   : > { %s2302_s21 = sadd.f32 -2.0, %s1217_s13  ;;  %s809_s17 = sceil.f32 %s1259_s22  ;;  %v363_v2 = vmul.f32 %v343_v53, %v343_v53  ;;  %v243_v7 = vsel %vm242_vm4, %v1238_v32, %v241_v56  ;;  %v364_v8 = vmul.f32 %v344_v57, %v344_v57  ;;  %v248_v10 = vmul.f32 %v928_v60, %v1255_v37  ;;  %v930_v18 = vpop.eup %929 }
  0x49   : > { %s810_s28 = sfloor.f32 %s1259_s22  ;;  %s2303_s23 = sadd.f32 2.0, %s1217_s13  ;;  %v410_v63 = vstv %s1276_s20  ;;  %v188_v13 = vsel %vm186_vm3, %v187_v59, %v185_v0  ;;  %v1373_v14 = vstv %s753_s26  ;;  %v246_v15 = vsel %vm244_vm6, %v245_v1, %v243_v7  ;;  %v932_v32 = vpop.eup %931 }
  0x4a   : > { %v1310_v55 = vstv %s2302_s21  ;;  %s1324_s21 = scvt.s32.f32 %s802_s24  ;;  %s2420_s29 = smov (!%p803_p0, %s804_s29), %s805_s12  ;;  %v407_v62 = vstv %s1278_s2  ;;  %v411_v12 = vsub.f32 %v1194_v5, %v410_v63  ;;  %v366_v17 = vadd.f32 %v365_v3, %v363_v2 }
  0x4b   : > { %v1319_v58 = vstv %s2303_s23  ;;  %s2422_s17 = smov (!%p808_p1, %s809_s17), %s810_s28  ;;  %vm153_vm5 = vcmp.ge.f32.partialorder %v1192_v4, %v1310_v55  ;;  %p813_p2 = scmp.lt.s32.totalorder %s1276_s20, 0  ;;  %vm154_vm7 = vcmp.ge.f32.partialorder %v1196_v6, %v1310_v55  ;;  %v408_v11 = vsub.f32 %v1192_v4, %v407_v62 }
  0x4c   : > { %s814_s13 = sceil.f32 %s1276_s20  ;;  %s815_s5 = sfloor.f32 %s1276_s20  ;;  %vm156_vm8 = vcmp.le.f32.partialorder %v1192_v4, %v1319_v58  ;;  %v189_v19 = vadd.f32 1.0, %v181_v9  ;;  %v367_v21 = vadd.f32 %v365_v3, %v364_v8  ;;  %v409_v22 = vsub.f32 %v1196_v6, %v407_v62 }
  0x4d   : > { %s457_s22 = sadd.s32 10, %s1182_s3  ;;  %s755_s24 = sadd.f32 -2.0, %s1324_s21  ;;  %v190_v23 = vadd.f32 1.0, %v188_v13  ;;  %v250_v24 = vsel %vm249_vm9, %v1255_v37, %v248_v10  ;;  %v428_v25 = vmul.f32 %v408_v11, %v408_v11  ;;  %v430_v26 = vmul.f32 %v411_v12, %v411_v12  ;;  %vm1446_vm4 = vmand %vm153_vm5, %vm156_vm8 }
  0x4e   : > { %s1367_s23 = sld [smem:[#allocation2 + %s457_s22]]  ;;  %s807_s12 = scvt.f32.s32 %s2420_s29  ;;  %vm157_vm12 = vcmp.le.f32.partialorder %v1196_v6, %v1319_v58  ;;  %vm165_vm13 = vcmp.le.f32.partialorder %v1194_v5, %v1290_v48  ;;  %vm218_vm14 = vcmp.ge.f32.partialorder %v1192_v4, %v1373_v14  ;;  %v254_v28 = vadd.f32 1.0, %v246_v15  ;;  %vm1485_vm6 = vmand %vm1446_vm4, %vm161_vm11 }
  0x4f   : > { %s459_s28 = sadd.s32 11, %s1182_s3  ;;  %s2304_s22 = sadd.f32 -2.0, %s1249_s4  ;;  %v306_v30 = vmul.f32 %v930_v18, %v1274_v41  ;;  %v1416_v31 = vadd.f32 1e-06, %v366_v17  ;;  %933 = vrcp.f32 %v189_v19  ;;  %v253_v33 = vsel %vm251_vm10, %v252_v16, %v250_v24  ;;  %vm1463_vm5 = vmand %vm154_vm7, %vm157_vm12 }
  0x50   : > { %s2424_s13 = smov (!%p813_p2, %s814_s13), %s815_s5  ;;  %s1392_s26 = sld [smem:[#allocation2 + %s459_s28]]  ;;  %v1423_v34 = vadd.f32 1e-06, %v367_v21  ;;  %v429_v35 = vmul.f32 %v409_v22, %v409_v22  ;;  %935 = vrcp.f32 %v190_v23  ;;  %vm219_vm1 = vcmp.ge.f32.partialorder %v1196_v6, %v1373_v14  ;;  %vm1499_vm9 = vmand %vm1463_vm5, %vm161_vm11 }
  0x51   : > { %v1382_v20 = vstv %s2304_s22  ;;  %s522_s29 = sadd.s32 12, %s1182_s3  ;;  %s812_s20 = scvt.f32.s32 %s2422_s17  ;;  %v431_v36 = vadd.f32 %v430_v26, %v428_v25  ;;  %937 = vrcp.f32 %v254_v28  ;;  %vm309_vm3 = vcmp.eq.f32.partialorder %v1274_v41, 0.0  ;;  %vm1528_vm12 = vmand %vm1485_vm6, %vm165_vm13 }
  0x52   : > { %s1406_s5 = sld [smem:[#allocation2 + %s522_s29]]  ;;  %s2305_s28 = sadd.f32 2.0, %s1263_s25  ;;  %vm226_vm0 = vcmp.ge.f32.partialorder %v1194_v5, %v1382_v20  ;;  %v310_v37 = vand.u32 2147483648, %v1274_v41  ;;  %v255_v40 = vadd.f32 1.0, %v253_v33  ;;  %v308_v42 = vsel %vm307_vm15, %v1274_v41, %v306_v30 }
  0x53   : > { %s1414_s22 = scvt.s32.f32 %s807_s12  ;;  %s524_s4 = sadd.s32 13, %s1182_s3  ;;  %v313_v43 = vmul.f32 %v932_v32, %v1297_v50  ;;  %939 = vrsqrt.f32 %v1416_v31  ;;  %v432_v45 = vadd.f32 %v430_v26, %v429_v35  ;;  %v1475_v51 = vadd.f32 1e-06, %v431_v36 }
  0x54   : > { %v1410_v29 = vstv %s2305_s28  ;;  %p818_p3 = scmp.lt.s32.totalorder %s1278_s2, 0  ;;  %s819_s25 = sceil.f32 %s1278_s2  ;;  %v475_v38 = vstv %s1367_s23  ;;  %941 = vrsqrt.f32 %v1423_v34  ;;  %vm314_vm8 = vcmp.eq.f32.partialorder %v1297_v50, inf }
  0x55   : > { %s820_s27 = sfloor.f32 %s1278_s2  ;;  %s1431_s17 = sld [smem:[#allocation2 + %s524_s4]]  ;;  %vm221_vm2 = vcmp.le.f32.partialorder %v1192_v4, %v1410_v29  ;;  %v476_v49 = vsub.f32 %v1194_v5, %v475_v38  ;;  %vm222_vm7 = vcmp.le.f32.partialorder %v1196_v6, %v1410_v29  ;;  %943 = vrcp.f32 %v255_v40 }
  0x56   : > { %s272_s12 = sadd.f32 2.0, %s1324_s21  ;;  %s1438_s29 = scvt.s32.f32 %s812_s20  ;;  %v472_v46 = vstv %s1392_s26  ;;  %vm1511_vm10 = vmand %vm218_vm14, %vm221_vm2  ;;  %v311_v62 = vsel %vm309_vm3, %v310_v37, %v308_v42  ;;  %vm316_vm11 = vcmp.eq.f32.partialorder %v1297_v50, 0.0  ;;  %v317_v63 = vand.u32 2147483648, %v1297_v50 }
  0x57   : > { %s817_s28 = scvt.f32.s32 %s2424_s13  ;;  %s2426_s25 = smov (!%p818_p3, %s819_s25), %s820_s27  ;;  %v473_v52 = vsub.f32 %v1192_v4, %v472_v46  ;;  %v474_v53 = vsub.f32 %v1196_v6, %v472_v46  ;;  %v495_v56 = vmul.f32 %v476_v49, %v476_v49  ;;  %v315_v41 = vsel %vm314_vm8, %v1297_v50, %v313_v43  ;;  %vm1548_vm14 = vmand %vm219_vm1, %vm222_vm7 }
  0x58   : > { %v540_v54 = vstv %s1406_s5  ;;  %s822_s27 = scvt.f32.s32 %s2426_s25  ;;  %v1535_v2 = vadd.f32 1e-06, %v432_v45  ;;  %945 = vrsqrt.f32 %v1475_v51  ;;  %p823_p5 = scmp.lt.s32.totalorder %s1367_s23, 0  ;;  %vm1562_vm15 = vmand %vm1511_vm10, %vm226_vm0  ;;  %vm230_vm1 = vcmp.le.f32.partialorder %v1194_v5, %v1403_v27 }
  0x59   : > { %v541_v57 = vsub.f32 %v1194_v5, %v540_v54  ;;  %v493_v59 = vmul.f32 %v473_v52, %v473_v52  ;;  %v494_v60 = vmul.f32 %v474_v53, %v474_v53  ;;  %s1520_s4 = scvt.s32.f32 %s817_s28  ;;  %s824_s25 = sceil.f32 %s1367_s23  ;;  %v1540_v7 = vpop.eup %933  ;;  %vm1575_vm2 = vmand %vm1499_vm9, %vm165_vm13  ;;  %v1581_v17 = vstv %s755_s24 }
  0x5a   : > { %s825_s28 = sfloor.f32 %s1367_s23  ;;  %p828_p6 = scmp.lt.s32.totalorder %s1392_s26, 0  ;;  %v1555_v13 = vpop.eup %935  ;;  %v1585_v18 = vstv %s272_s12  ;;  %v318_v19 = vsel %vm316_vm11, %v317_v63, %v315_v41  ;;  %v319_v21 = vadd.f32 1.0, %v311_v62  ;;  %vm1597_vm13 = vmand %vm1548_vm14, %vm226_vm0  ;;  %947 = vrsqrt.f32 %v1535_v2 }
  0x5b   : > { %v537_v61 = vstv %s1431_s17  ;;  %v496_v3 = vadd.f32 %v495_v56, %v493_v59  ;;  %v497_v9 = vadd.f32 %v495_v56, %v494_v60  ;;  %v560_v12 = vmul.f32 %v541_v57, %v541_v57  ;;  %s829_s2 = sceil.f32 %s1392_s26  ;;  %s830_s13 = sfloor.f32 %s1392_s26  ;;  %v938_v15 = vpop.eup %937  ;;  %vm1617_vm0 = vmand %vm1562_vm15, %vm230_vm1 }
  0x5c   : > { %v538_v0 = vsub.f32 %v1192_v4, %v537_v61  ;;  %v539_v10 = vsub.f32 %v1196_v6, %v537_v61  ;;  %s1589_s20 = scvt.s32.f32 %s822_s27  ;;  %s760_s15 = sadd.f32 -2.0, %s1520_s4  ;;  %v193_v30 = vsel %vm1528_vm12, %v1540_v7, 0.0  ;;  %vm283_vm3 = vcmp.ge.f32.partialorder %v1192_v4, %v1581_v17  ;;  %vm1657_vm5 = vmand %vm1597_vm13, %vm230_vm1 }
  0x5d   : > { %v940_v48 = vpop.eup %939  ;;  %s2326_s21 = sadd.f32 -2.0, %s1272_s30  ;;  %s2428_s25 = smov (!%p823_p5, %s824_s25), %s825_s28  ;;  %v1610_v50 = vadd.f32 1e-06, %v496_v3  ;;  %v1629_v26 = vadd.f32 1e-06, %v497_v9  ;;  %vm286_vm4 = vcmp.le.f32.partialorder %v1192_v4, %v1585_v18  ;;  %v320_v32 = vadd.f32 1.0, %v318_v19 }
  0x5e   : > { %v558_v11 = vmul.f32 %v538_v0, %v538_v0  ;;  %v942_v20 = vpop.eup %941  ;;  %s2329_s24 = sadd.f32 2.0, %s1272_s30  ;;  %s2430_s2 = smov (!%p828_p6, %s829_s2), %s830_s13  ;;  %v559_v28 = vmul.f32 %v539_v10, %v539_v10  ;;  %v194_v33 = vsel %vm1575_vm2, %v1555_v13, 0.0  ;;  %949 = vrcp.f32 %v319_v21 }
  0x5f   : > { %v1603_v23 = vstv %s2326_s21  ;;  %s405_s30 = sadd.f32 2.0, %s1520_s4  ;;  %s587_s13 = sadd.s32 14, %s1182_s3  ;;  %v944_v38 = vpop.eup %943  ;;  %v258_v39 = vsel %vm1617_vm0, %v938_v15, 0.0  ;;  %vm284_vm6 = vcmp.ge.f32.partialorder %v1196_v6, %v1581_v17  ;;  %vm287_vm7 = vcmp.le.f32.partialorder %v1196_v6, %v1585_v18 }
  0x60   : > { %v1623_v25 = vstv %s2329_s24  ;;  %v561_v29 = vadd.f32 %v560_v12, %v558_v11  ;;  %s2330_s23 = sadd.f32 -2.0, %s1414_s22  ;;  %v371_v40 = vmul.f32 %v940_v48, %v1416_v31  ;;  %vm372_vm8 = vcmp.eq.f32.partialorder %v1416_v31, inf  ;;  %s589_s27 = sadd.s32 15, %s1182_s3 }
  0x61   : > { %s2331_s26 = sadd.f32 2.0, %s1414_s22  ;;  %s827_s22 = scvt.f32.s32 %s2428_s25  ;;  %951 = vrsqrt.f32 %v1610_v50  ;;  %vm291_vm9 = vcmp.ge.f32.partialorder %v1194_v5, %v1603_v23  ;;  %v378_v27 = vmul.f32 %v942_v20, %v1423_v34  ;;  %v562_v42 = vadd.f32 %v560_v12, %v559_v28 }
  0x62   : > { %v1644_v35 = vstv %s2330_s23  ;;  %s759_s12 = sadd.f32 -2.0, %s1589_s20  ;;  %s832_s28 = scvt.f32.s32 %s2430_s2  ;;  %953 = vrsqrt.f32 %v1629_v26  ;;  %v1678_v43 = vadd.f32 1e-06, %v561_v29  ;;  %v946_v44 = vpop.eup %945  ;;  %vm374_vm10 = vcmp.eq.f32.partialorder %v1416_v31, 0.0 }
  0x63   : > { %v1648_v36 = vstv %s2331_s26  ;;  %p833_p7 = scmp.lt.s32.totalorder %s1406_s5, 0  ;;  %955 = vrcp.f32 %v320_v32  ;;  %s2334_s21 = sadd.f32 -2.0, %s1438_s29  ;;  %vm379_vm11 = vcmp.eq.f32.partialorder %v1423_v34, inf  ;;  %v259_v46 = vsel %vm1657_vm5, %v944_v38, 0.0 }
  0x64   : > { %s1686_s3 = sld [smem:[#allocation2 + %s587_s13]]  ;;  %v1692_v49 = vadd.f32 %v258_v39, %v193_v30  ;;  %s2335_s23 = sadd.f32 2.0, %s1438_s29  ;;  %v375_v53 = vand.u32 2147483648, %v1416_v31  ;;  %vm295_vm12 = vcmp.le.f32.partialorder %v1194_v5, %v1623_v25  ;;  %v373_v54 = vsel %vm372_vm8, %v1416_v31, %v371_v40  ;;  %v948_v59 = vpop.eup %947 }
  0x65   : > { %v1682_v45 = vstv %s2334_s21  ;;  %s1688_s24 = sld [smem:[#allocation2 + %s589_s27]]  ;;  %s834_s26 = sceil.f32 %s1406_s5  ;;  %v382_v55 = vand.u32 2147483648, %v1423_v34  ;;  %v1709_v56 = vadd.f32 1e-06, %v562_v42  ;;  %957 = vrsqrt.f32 %v1678_v43 }
  0x66   : > { %v1696_v52 = vstv %s2335_s23  ;;  %s835_s21 = sfloor.f32 %s1406_s5  ;;  %p838_p9 = scmp.lt.s32.totalorder %s1431_s17, 0  ;;  %vm348_vm14 = vcmp.ge.f32.partialorder %v1192_v4, %v1682_v45  ;;  %v380_v57 = vsel %vm379_vm11, %v1423_v34, %v378_v27  ;;  %vm381_vm15 = vcmp.eq.f32.partialorder %v1423_v34, 0.0 }
  0x67   : > { %v436_v58 = vmul.f32 %v946_v44, %v1475_v51  ;;  %s839_s29 = sceil.f32 %s1431_s17  ;;  %s840_s27 = sfloor.f32 %s1431_s17  ;;  %v1721_v60 = vadd.f32 %v259_v46, %v194_v33  ;;  %vm349_vm1 = vcmp.ge.f32.partialorder %v1196_v6, %v1682_v45  ;;  %vm351_vm2 = vcmp.le.f32.partialorder %v1192_v4, %v1696_v52 }
  0x68   : > { %vm352_vm13 = vcmp.le.f32.partialorder %v1196_v6, %v1696_v52  ;;  %vm437_vm0 = vcmp.eq.f32.partialorder %v1475_v51, inf  ;;  %s2432_s26 = smov (!%p833_p7, %s834_s26), %s835_s21  ;;  %v376_v61 = vsel %vm374_vm10, %v375_v53, %v373_v54  ;;  %v1738_v47 = vstv %s759_s12  ;;  %s1746_s23 = scvt.s32.f32 %s827_s22  ;;  %v1764_v1 = vpop.eup %949  ;;  %vm1772_vm10 = vmand %vm283_vm3, %vm286_vm4 }
  0x69   : > { %v1742_v62 = vstv %s760_s15  ;;  %s1750_s13 = scvt.s32.f32 %s832_s28  ;;  %959 = vrsqrt.f32 %v1709_v56  ;;  %vm356_vm5 = vcmp.ge.f32.partialorder %v1194_v5, %v1644_v35  ;;  %v383_v31 = vsel %vm381_vm15, %v382_v55, %v380_v57  ;;  %s2434_s29 = smov (!%p838_p9, %s839_s29), %s840_s27  ;;  %vm1795_vm4 = vmand %vm284_vm6, %vm287_vm7 }
  0x6a   : > { %vm439_vm8 = vcmp.eq.f32.partialorder %v1475_v51, 0.0  ;;  %v440_v63 = vand.u32 2147483648, %v1475_v51  ;;  %v438_v41 = vsel %vm437_vm0, %v1475_v51, %v436_v58  ;;  %v443_v3 = vmul.f32 %v948_v59, %v1535_v2  ;;  %s837_s15 = scvt.f32.s32 %s2432_s26  ;;  %s2340_s5 = sadd.f32 2.0, %s1589_s20  ;;  %vm1816_vm6 = vmand %vm1772_vm10, %vm291_vm9 }
  0x6b   : > { %v602_v0 = vstv %s1688_s24  ;;  %v952_v9 = vpop.eup %951  ;;  %v384_v10 = vadd.f32 1.0, %v376_v61  ;;  %v1784_v11 = vstv %s405_s30  ;;  %vm444_vm3 = vcmp.eq.f32.partialorder %v1535_v2, inf  ;;  %s762_s17 = sadd.f32 -2.0, %s1746_s23  ;;  %s842_s2 = scvt.f32.s32 %s2434_s29 }
  0x6c   : > { %v603_v7 = vsub.f32 %v1192_v4, %v602_v0  ;;  %v604_v8 = vsub.f32 %v1196_v6, %v602_v0  ;;  %v605_v12 = vstv %s1686_s3  ;;  %v954_v13 = vpop.eup %953  ;;  %vm360_vm11 = vcmp.le.f32.partialorder %v1194_v5, %v1648_v36  ;;  %s761_s20 = sadd.f32 -2.0, %s1750_s13  ;;  %s1850_s25 = scvt.s32.f32 %s837_s15 }
  0x6d   : > { %v385_v15 = vadd.f32 1.0, %v383_v31  ;;  %vm413_vm15 = vcmp.ge.f32.partialorder %v1192_v4, %v1738_v47  ;;  %v1805_v16 = vstv %s2340_s5  ;;  %v606_v18 = vsub.f32 %v1194_v5, %v605_v12  ;;  %v1809_v19 = vpop.eup %955  ;;  %s467_s4 = sadd.f32 2.0, %s1750_s13  ;;  %p848_p10 = scmp.lt.s32.totalorder %s1688_s24, 0 }
  0x6e   : > { %v441_v21 = vsel %vm439_vm8, %v440_v63, %v438_v41  ;;  %v447_v48 = vand.u32 2147483648, %v1535_v2  ;;  %v623_v22 = vmul.f32 %v603_v7, %v603_v7  ;;  %v624_v20 = vmul.f32 %v604_v8, %v604_v8  ;;  %vm1840_vm8 = vmand %vm1795_vm4, %vm291_vm9  ;;  %s849_s30 = sceil.f32 %s1688_s24  ;;  %s850_s12 = sfloor.f32 %s1688_s24 }
  0x6f   : > { %v445_v24 = vsel %vm444_vm3, %v1535_v2, %v443_v3  ;;  %vm446_vm10 = vcmp.eq.f32.partialorder %v1535_v2, 0.0  ;;  %v501_v51 = vmul.f32 %v952_v9, %v1610_v50  ;;  %v625_v28 = vmul.f32 %v606_v18, %v606_v18  ;;  %v958_v29 = vpop.eup %957  ;;  %vm1858_vm9 = vmand %vm1816_vm6, %vm295_vm12  ;;  %s1879_s22 = scvt.s32.f32 %s842_s2  ;;  %p843_p11 = scmp.lt.s32.totalorder %s1686_s3, 0 }
  0x70   : > { %961 = vrcp.f32 %v384_v10  ;;  %vm416_vm3 = vcmp.le.f32.partialorder %v1192_v4, %v1805_v16  ;;  %vm502_vm0 = vcmp.eq.f32.partialorder %v1610_v50, inf  ;;  %v508_v32 = vmul.f32 %v954_v13, %v1629_v26  ;;  %vm1872_vm6 = vmand %vm348_vm14, %vm351_vm2  ;;  %s844_s28 = sceil.f32 %s1686_s3  ;;  %s845_s26 = sfloor.f32 %s1686_s3 }
  0x71   : > { %963 = vrcp.f32 %v385_v15  ;;  %v449_v33 = vadd.f32 1.0, %v441_v21  ;;  %vm504_vm4 = vcmp.eq.f32.partialorder %v1610_v50, 0.0  ;;  %vm509_vm7 = vcmp.eq.f32.partialorder %v1629_v26, inf  ;;  %vm1888_vm14 = vmand %vm349_vm1, %vm352_vm13  ;;  %s2436_s30 = smov (!%p848_p10, %s849_s30), %s850_s12  ;;  %s470_s21 = sadd.f32 2.0, %s1746_s23 }
  0x72   : > { %v448_v37 = vsel %vm446_vm10, %v447_v48, %v445_v24  ;;  %v505_v39 = vand.u32 2147483648, %v1610_v50  ;;  %v626_v40 = vadd.f32 %v625_v28, %v623_v22  ;;  %v627_v27 = vadd.f32 %v625_v28, %v624_v20  ;;  %vm1905_vm1 = vmand %vm1840_vm8, %vm295_vm12  ;;  %s764_s24 = sadd.f32 -2.0, %s1850_s25  ;;  %s2438_s28 = smov (!%p843_p11, %s844_s28), %s845_s26 }
  0x73   : > { %v960_v42 = vpop.eup %959  ;;  %v503_v2 = vsel %vm502_vm0, %v1610_v50, %v501_v51  ;;  %vm511_vm2 = vcmp.eq.f32.partialorder %v1629_v26, 0.0  ;;  %v512_v46 = vand.u32 2147483648, %v1629_v26  ;;  %v566_v53 = vmul.f32 %v958_v29, %v1678_v43  ;;  %vm1925_vm12 = vmand %vm1872_vm6, %vm356_vm5  ;;  %s763_s29 = sadd.f32 -2.0, %s1879_s22  ;;  %s852_s3 = scvt.f32.s32 %s2436_s30 }
  0x74   : > { %v510_v52 = vsel %vm509_vm7, %v1629_v26, %v508_v32  ;;  %vm567_vm13 = vcmp.eq.f32.partialorder %v1678_v43, inf  ;;  %v573_v54 = vmul.f32 %v960_v42, %v1709_v56  ;;  %v1918_v55 = vadd.f32 1e-06, %v626_v40  ;;  %vm1940_vm10 = vmand %vm1888_vm14, %vm356_vm5  ;;  %s532_s13 = sadd.f32 2.0, %s1879_s22  ;;  %s847_s27 = scvt.f32.s32 %s2438_s28 }
  0x75   : > { %vm417_vm7 = vcmp.le.f32.partialorder %v1196_v6, %v1805_v16  ;;  %965 = vrcp.f32 %v449_v33  ;;  %v477_v57 = vstv %s761_s20  ;;  %vm574_vm0 = vcmp.eq.f32.partialorder %v1709_v56, inf  ;;  %vm1956_vm5 = vmand %vm413_vm15, %vm416_vm3  ;;  %s2055_s15 = scvt.s32.f32 %s852_s3  ;;  %s535_s5 = sadd.f32 2.0, %s1850_s25 }
  0x76   : > { %v450_v59 = vadd.f32 1.0, %v448_v37  ;;  %v506_v61 = vsel %vm504_vm4, %v505_v39, %v503_v2  ;;  %v570_v31 = vand.u32 2147483648, %v1678_v43  ;;  %v1948_v63 = vadd.f32 1e-06, %v627_v27  ;;  %vm1976_vm15 = vmand %vm1925_vm12, %vm360_vm11  ;;  %s2104_s23 = scvt.s32.f32 %s847_s27  ;;  %s118_s25 = sand.u32 1, %s1064_s7  }
  0x77   : > { %v513_v50 = vsel %vm511_vm2, %v512_v46, %v510_v52  ;;  %v568_v0 = vsel %vm567_vm13, %v1678_v43, %v566_v53  ;;  %vm569_vm8 = vcmp.eq.f32.partialorder %v1678_v43, 0.0  ;;  %v577_v34 = vand.u32 2147483648, %v1709_v56  ;;  %s597_s20 = sadd.f32 2.0, %s2055_s15  ;;  %s749_s30 = sshll.u32 %s118_s25, 4 }
  0x78   : > { %v480_v41 = vstv %s467_s4  ;;  %v575_v3 = vsel %vm574_vm0, %v1709_v56, %v573_v54  ;;  %vm576_vm3 = vcmp.eq.f32.partialorder %v1709_v56, 0.0  ;;  %967 = vrsqrt.f32 %v1918_v55  ;;  %s766_s2 = sadd.f32 -2.0, %s2104_s23  ;;  %s772_s12 = sshll.u32 %s1072_s9, 8 }
  0x79   : > { %v323_v7 = vsel %vm1858_vm9, %v1764_v1, 0.0  ;;  %vm2361_vm4 = vcmp.ge.f32.partialorder %v1196_v6, %v1738_v47  ;;  %vm425_vm14 = vcmp.le.f32.partialorder %v1194_v5, %v1784_v11  ;;  %v514_v9 = vadd.f32 1.0, %v506_v61  ;;  %s600_s4 = sadd.f32 2.0, %s2104_s23  ;;  %s120_s22 = scalar_lea.vmem [#allocation5], %s749_s30 }
  0x7a   : > { %vm1998_vm6 = vmand %vm2361_vm4, %vm417_vm7  ;;  %969 = vrsqrt.f32 %v1948_v63  ;;  %v962_v1 = vpop.eup %961  ;;  %v324_v10 = vsel %vm1905_vm1, %v1809_v19, 0.0  ;;  %vm2364_vm9 = vcmp.ge.f32.partialorder %v1194_v5, %v1742_v62  ;;  %v515_v12 = vadd.f32 1.0, %v513_v50  ;;  %s670_s28 = sshll.u32 %s120_s22, 4  ;;  %s2249_s9 = scalar_lea.sflag [#allocation3], %s118_s25  ;;  %s2245_s28 = int_to_ptr.vmem [resolvable:$true] %s670_s28 }
  0x7b   : > { %vm2014_vm2 = vmand %vm1956_vm5, %vm2364_vm9  ;;  %971 = vrcp.f32 %v450_v59  ;;  %v571_v13 = vsel %vm569_vm8, %v570_v31, %v568_v0  ;;  %v2020_v14 = vpop.eup %963  ;;  %vm478_vm13 = vcmp.ge.f32.partialorder %v1192_v4, %v477_v57  ;;  %vm481_vm12 = vcmp.le.f32.partialorder %v1192_v4, %v480_v41  ;;  %s1083_s3 = smov [#allocation5]  }
  0x7c   : > { %vm2027_vm1 = vmand %vm1940_vm10, %vm360_vm11  ;;  %v485_v43 = vstv %s762_s17  ;;  %v578_v16 = vsel %vm576_vm3, %v577_v34, %v575_v3  ;;  %vm479_vm11 = vcmp.ge.f32.partialorder %v1196_v6, %v477_v57  ;;  %vm482_vm10 = vcmp.le.f32.partialorder %v1196_v6, %v480_v41  ;;  %s765_s17 = sadd.f32 -2.0, %s2055_s15 }
  0x7d   : > { %vm2369_vm7 = vmmov %vm2364_vm9  ;;  %v2050_v18 = vstv %s470_s21  ;;  %v550_v19 = vstv %s764_s24  ;;  %973 = vrcp.f32 %v514_v9  ;;  %v542_v62 = vstv %s763_s29  ;;  %s2243_s24 = scalar_lea.hbm %s2296_s1, %s772_s12  ;;  %s998_s29 = scalar_lea.vmem %s2245_s28, 256 }
  0x7e   : > { %vm2042_vm0 = vmand %vm1998_vm6, %vm2369_vm7  ;;  %v545_v17 = vstv %s532_s13  ;;  %v579_v21 = vadd.f32 1.0, %v571_v13  ;;  %vm486_vm3 = vcmp.ge.f32.partialorder %v1194_v5, %v485_v43  ;;  %975 = vrcp.f32 %v515_v12  ;;  %p999_p12 = scmp.ne.s32.totalorder %s2245_s28, %s998_s29  ;;  %s1002_s13 = sshll.u32 %s1083_s3, 4  ;;  %s1003_s13 = int_to_ptr.vmem [resolvable:$false] %s1002_s13 }
  0x7f   : > { %vm2062_vm5 = vmand %vm2014_vm2, %vm425_vm14  ;;  %v580_v22 = vadd.f32 1.0, %v578_v16  ;;  %v966_v20 = vpop.eup %965  ;;  %v325_v24 = vadd.f32 %v323_v7, %v1692_v49  ;;  %v326_v51 = vadd.f32 %v324_v10, %v1721_v60  ;;  %vm490_vm6 = vcmp.le.f32.partialorder %v1194_v5, %v2050_v18  ;;  %s1004_s27 = scalar_lea.vmem %s1003_s13, 512  ;;  %p1005_p1 = scmp.lt.s32.totalorder %s2245_s28, %s1003_s13 }
  0x80   : > { %vm2073_vm8 = vmand %vm478_vm13, %vm481_vm12  ;;  %v388_v29 = vsel %vm1976_vm15, %v962_v1, 0.0  ;;  %vm543_vm2 = vcmp.ge.f32.partialorder %v1192_v4, %v542_v62  ;;  %vm546_vm13 = vcmp.le.f32.partialorder %v1192_v4, %v545_v17  ;;  %vm551_vm12 = vcmp.ge.f32.partialorder %v1194_v5, %v550_v19  ;;  %p1000_p13 = pnand %p999_p12, %p1136_p4  ;;  %p1006_p2 = scmp.lt.s32.totalorder %s1004_s27, %s998_s29 }
  0x81   : > { %vm2084_vm4 = vmand %vm479_vm11, %vm482_vm10  ;;  %vm547_vm7 = vcmp.le.f32.partialorder %v1196_v6, %v545_v17  ;;  %v554_v11 = vstv %s535_s5  ;;  %977 = vrcp.f32 %v579_v21  ;;  %v389_v32 = vsel %vm2027_vm1, %v2020_v14, 0.0 }
  0x82   : > { %vm2097_vm9 = vmand %vm2042_vm0, %vm425_vm14  ;;  %vm544_vm14 = vcmp.ge.f32.partialorder %v1196_v6, %v542_v62  ;;  %v968_v30 = vpop.eup %967  ;;  %979 = vrcp.f32 %v580_v22  ;;  %vm632_vm11 = vcmp.eq.f32.partialorder %v1918_v55, inf  ;;  %v635_v33 = vand.u32 2147483648, %v1918_v55  ;;  %p1001_p0 = pneg %p1000_p13  ;;  %p1007_p3 = por %p1006_p2, %p1005_p1 }
  0x83   : > { %vm2111_vm15 = vmand %vm2073_vm8, %vm486_vm3  ;;  %v631_v39 = vmul.f32 %v968_v30, %v1918_v55  ;;  %vm634_vm1 = vcmp.eq.f32.partialorder %v1918_v55, 0.0  ;;  %vm639_vm8 = vcmp.eq.f32.partialorder %v1948_v63, inf  ;;  %v642_v40 = vand.u32 2147483648, %v1948_v63 }
  0x84   : > { %vm2125_vm0 = vmand %vm2084_vm4, %vm486_vm3  ;;  %v970_v38 = vpop.eup %969  ;;  %v390_v42 = vadd.f32 %v388_v29, %v325_v24  ;;  %vm641_vm4 = vcmp.eq.f32.partialorder %v1948_v63, 0.0  ;;  %v607_v53 = vstv %s765_s17  ;;  %v610_v45 = vstv %s597_s20  ;;  %p1008_p5 = pnand %p1007_p3, %p1001_p0 }
  0x85   : > { %vm2135_vm10 = vmand %vm543_vm2, %vm546_vm13  ;;  %v972_v27 = vpop.eup %971  ;;  %v638_v2 = vmul.f32 %v970_v38, %v1948_v63  ;;  %vm555_vm13 = vcmp.le.f32.partialorder %v1194_v5, %v554_v11  ;;  %v633_v52 = vsel %vm632_vm11, %v1918_v55, %v631_v39  ;;  %v391_v54 = vadd.f32 %v389_v32, %v326_v51 }
  0x86   : > { %vm2147_vm3 = vmand %vm544_vm14, %vm547_vm7  ;;  %v453_v25 = vsel %vm2062_vm5, %v966_v20, 0.0  ;;  %v636_v58 = vsel %vm634_vm1, %v635_v33, %v633_v52  ;;  %v454_v31 = vsel %vm2097_vm9, %v972_v27, 0.0  ;;  %vm608_vm9 = vcmp.ge.f32.partialorder %v1192_v4, %v607_v53 }
  0x87   : > { %vm2159_vm2 = vmand %vm2111_vm15, %vm490_vm6  ;;  %v640_v59 = vsel %vm639_vm8, %v1948_v63, %v638_v2  ;;  %v974_v61 = vpop.eup %973  ;;  %v644_v55 = vadd.f32 1.0, %v636_v58  ;;  %v615_v34 = vstv %s766_s2  ;;  %v455_v41 = vadd.f32 %v453_v25, %v390_v42 }
  0x88   : > { %vm2173_vm15 = vmand %vm2135_vm10, %vm551_vm12  ;;  %v643_v50 = vsel %vm641_vm4, %v642_v40, %v640_v59  ;;  %v976_v0 = vpop.eup %975  ;;  %v456_v7 = vadd.f32 %v454_v31, %v391_v54  ;;  %v518_v8 = vsel %vm2159_vm2, %v974_v61, 0.0  ;;  %vm616_vm1 = vcmp.ge.f32.partialorder %v1194_v5, %v615_v34 }
  0x89   : > { %vm2188_vm5 = vmand %vm2147_vm3, %vm551_vm12  ;;  %vm611_vm12 = vcmp.le.f32.partialorder %v1192_v4, %v610_v45  ;;  %v645_v26 = vadd.f32 1.0, %v643_v50  ;;  %981 = vrcp.f32 %v644_v55  ;;  %v520_v12 = vadd.f32 %v518_v8, %v455_v41 }
  0x8a   : > { %vm2198_vm14 = vmand %vm2125_vm0, %vm490_vm6  ;;  %vm609_vm6 = vcmp.ge.f32.partialorder %v1196_v6, %v607_v53  ;;  %vm612_vm0 = vcmp.le.f32.partialorder %v1196_v6, %v610_v45  ;;  %v619_v6 = vstv %s600_s4 }
  0x8b   : > { %vm2209_vm7 = vmand %vm2173_vm15, %vm555_vm13  ;;  %983 = vrcp.f32 %v645_v26  ;;  %v978_v1 = vpop.eup %977  ;;  %v519_v10 = vsel %vm2198_vm14, %v976_v0, 0.0  ;;  %vm620_vm4 = vcmp.le.f32.partialorder %v1194_v5, %v619_v6 }
  0x8c   : > { %vm2221_vm11 = vmand %vm2188_vm5, %vm555_vm13  ;;  %v980_v47 = vpop.eup %979  ;;  %v521_v13 = vadd.f32 %v519_v10, %v456_v7  ;;  %v583_v14 = vsel %vm2209_vm7, %v978_v1, 0.0 }
  0x8d   : > { %vm613_vm10 = vmand %vm608_vm9, %vm611_vm12  ;;  %v584_v4 = vsel %vm2221_vm11, %v980_v47, 0.0  ;;  %v585_v15 = vadd.f32 %v583_v14, %v520_v12 }
  0x8e   : > { %vm614_vm8 = vmand %vm609_vm6, %vm612_vm0  ;;  %v586_v43 = vadd.f32 %v584_v4, %v521_v13 }
  0x8f   : > { %vm617_vm3 = vmand %vm613_vm10, %vm616_vm1 }
  0x90   : > { %vm618_vm2 = vmand %vm614_vm8, %vm616_vm1 }
  0x91   : > { %vm621_vm13 = vmand %vm617_vm3, %vm620_vm4 }
  0x92   : > { %vm622_vm15 = vmand %vm618_vm2, %vm620_vm4 }
  0x93   : > { %v982_v16 = vpop.eup %981 }
  0x94   : > { %v648_v18 = vsel %vm621_vm13, %v982_v16, 0.0 }
  0x95   : > { %v984_v36 = vpop.eup %983  ;;  %v650_v56 = vadd.f32 %v648_v18, %v585_v15 }
  0x96   : > { %v649_v19 = vsel %vm622_vm15, %v984_v36, 0.0 }
  0x97   : > { %v651_v5 = vadd.f32 %v649_v19, %v586_v43  ;;  %652 = vst [vmem:[%s120_s22] sm:$0xff] %v650_v56 }
  0x99   : > { %653 = vst [vmem:[%s120_s22 + $0x8] sm:$0xff] %v651_v5 }
  0x9a   : > { %1011 = shalt.err (!%p1008_p5)
}
  0x9b   : > { %s1012_s15 = scalar_lea.hbm %s2243_s24, 256  ;;  %s1016_s17 = scalar_lea.hbm %s2296_s1, 512 }
  0x9c   : > { %p1013_p6 = scmp.ne.s32.totalorder %s2243_s24, %s1012_s15  ;;  %p1017_p10 = scmp.lt.u32.totalorder %s2243_s24, %s2296_s1 }
  0x9d   : > { %p1018_p11 = scmp.lt.u32.totalorder %s1016_s17, %s1012_s15  ;;  %p1020_p13 = scmp.lt.u32.totalorder %s1012_s15, %s2243_s24 }
  0x9e   : > { %p1014_p7 = pnand %p1013_p6, %p1136_p4 }
  0x9f   : > { %p1019_p12 = por %p1018_p11, %p1017_p10 }
  0xa0   : > { %p1015_p9 = pneg %p1014_p7 }
  0xa1   : > { %p1021_p0 = por %p1020_p13, %p1019_p12 }
  0xa3   : > { %p1022_p1 = pnand %p1021_p0, %p1015_p9 }
  0xa5   : > { %1025 = shalt.err (!%p1022_p1)
}
  0xa6   : > { %s1084_s4 = smov 128   ;;  %s1085_s25 = smov 8  }
  0xa7   : > { %857 = dma.vmem_to_hbm [thread:$0]  (%p1136_p4), %s2245_s28, 256, %s2243_s24, %s2249_s9, %s1084_s4, %s1084_s4, %s1085_s25  }
  0xa8 PF: > { %p869_p2 = scmp.ge.s32.totalorder %s1080_s11, 2  ;;  %s685_s30 = sand.u32 1, %s1060_s6  }
  0xa9   : > { %s686_s12 = scalar_lea.sflag [#allocation3], %s685_s30 }
  0xaa   : > { %p864_p3 = pnand %p869_p2, %p1143_p8 }
  0xac   : > { %1055 = dma.done.wait (!%p864_p3), %s686_s12, 256  }
  0xad   : > { %1057 = vsyncadd (!%p864_p3), %s686_s12, 4294967040  ;;  %s15_s11 = sadd.s32 1, %s1080_s11   ;;  %s2400_s6 = smov %s1064_s7 }
  0xae   : > { %p12_p5 = scmp.ge.s32.totalorder %s15_s11, 4   ;;  %s2401_s7 = smov %s1068_s8 }
  0xaf   : > { %s2402_s8 = smov %s1149_s19  ;;  %s2403_s9 = smov %s1076_s10 }
  0xb0   : > { %s2404_s10 = smov %s2406_s14  ;;  %14 = sbr.rel (!%p12_p5) target bundleno = 5 (0x5), region = 61 }
  0xb7   :  { %691 = vsyncpa [#allocation3], 1 }
  0xb8   :  { %693 = vsyncpa [#allocation3 + $0x1], 1 }
  0xb9   :  { %694 = vsyncpa [#allocation4], 1 }
  0xba   :  { %696 = vsyncpa [#allocation4 + $0x1], 1 }

</bundles_post_ra>
